<compile_context>
chip_gen: v7x
topology: tpu7x:2x2x1
jax: 0.10.0
libtpu: 0.0.40
codegen_flags: <defaults>
</compile_context>

<pallas_src>
import functools
import math

import numpy as np
import jax
import jax.numpy as jnp
from jax.experimental import pallas as pl
from jax.experimental.pallas import tpu as pltpu


def _pronoun_score_kernel(ids_ref,   # VMEM (TB, P) int32   1-based pronoun ids, 0 = pad
                          ctx_ref,   # VMEM (TB, C, D) f32  raw ELMo context reps
                          pe_ref,    # VMEM (C, D) f32/bf16 positional encodings (resident)
                          w_ref,     # VMEM (P, D) f32      folded head weight  w2^T * w1
                          b_ref,     # SMEM (1,)   f32      folded head bias
                          out_ref,   # VMEM (1, TB) f32     scores (lane-dense)
                          *, dims, fast_math):
    D = dims
    inv_sqrt_d = 1.0 / math.sqrt(D)
    TB, C, _ = ctx_ref.shape
    P = ids_ref.shape[-1]

    ctx_raw = ctx_ref[...]                                     # (TB, C, D) f32

    # ---- pronoun gather as a one-hot MXU matmul -----------------------------
    # ids are 1-based positions; 0 (and any out-of-range id) selects nothing,
    # giving an all-zero pronoun row exactly like the module's zero padding,
    # with no OOB VMEM read.  Kept in f32: the selection is exact (it feeds the
    # residual + layer-norm) and the extra MXU passes are free here.
    ids = ids_ref[...]                                         # (TB, P) int32
    pos = jax.lax.broadcasted_iota(jnp.int32, (TB, P, C), 2)
    sel = ((pos == (ids[..., None] - 1)) &
           (ids[..., None] > 0)).astype(jnp.float32)           # (TB, P, C)
    prn = jnp.einsum('bpc,bcd->bpd', sel, ctx_raw,
                     preferred_element_type=jnp.float32)       # (TB, P, D), pre-PE (as in module)

    # ---- pronoun_query_attention_layer: softmax(Q K^T / sqrt(D)) V ----------
    # K = V = context + positional encoding.  Both einsums contract trailing
    # dims, so no transpose of the context block is materialized.
    if fast_math:
        # bf16 MXU operands, f32 accumulation; 1/sqrt(D) folded into Q.
        # pe_ref is already bf16 -> no f32 (C, D) temp.  (On v5e the bf16 adds
        # are legalized via f32 by the compiler.)
        ctx_m = ctx_raw.astype(jnp.bfloat16) + pe_ref[...]
        q = (prn * inv_sqrt_d).astype(jnp.bfloat16)
        scores = jnp.einsum('bpd,bcd->bpc', q, ctx_m,
                            preferred_element_type=jnp.float32)          # (TB, P, C)
    else:
        ctx_m = ctx_raw + pe_ref[...]
        scores = jnp.einsum('bpd,bcd->bpc', prn, ctx_m,
                            preferred_element_type=jnp.float32) * inv_sqrt_d

    m = jnp.max(scores, axis=-1, keepdims=True)
    e = jnp.exp(scores - m)
    denom = jnp.sum(e, axis=-1, keepdims=True)
    if fast_math:
        attn = e * pl.reciprocal(denom, approx=True)           # EUP slot (softmax only)
        rep = jnp.einsum('bpc,bcd->bpd', attn.astype(jnp.bfloat16), ctx_m,
                         preferred_element_type=jnp.float32)              # (TB, P, D)
    else:
        attn = e / denom
        rep = jnp.einsum('bpc,bcd->bpd', attn, ctx_m,
                         preferred_element_type=jnp.float32)

    # ---- residual + layer_normalization (torch.std: ddof=1, eps on the std) --
    # Exact divide here: this factor scales every normalized feature and feeds
    # the output head directly.
    x = prn + rep                                              # (TB, P, D) f32
    mean = jnp.mean(x, axis=-1, keepdims=True)
    var = jnp.sum((x - mean) ** 2, axis=-1, keepdims=True) * (1.0 / (D - 1))
    y = (x - mean) / (jnp.sqrt(var) + 1e-6)

    # ---- fused output head: linear_1 (D->1) then linear_2 (P->1) ------------
    # score[b] = sum_{p,d} y[b,p,d] * w1[d] * w2[p] + (b1*sum(w2) + b2)
    s_pd = y * w_ref[...][None, :, :]                          # (TB, P, D)
    s_p = jnp.sum(s_pd, axis=-1)                               # (TB, P)
    s = jnp.sum(s_p, axis=-1)                                  # (TB,)
    out_ref[...] = (s + b_ref[0]).reshape(1, -1)               # lane-dense (1, TB) store


@functools.lru_cache(maxsize=None)
def _positional_encoding(context_len, dims, dtype_str):
    """Sinusoidal PE table (add_positional_encoding), built once per (C, D, dtype)."""
    pos = np.arange(context_len, dtype=np.float32)[:, None]
    div = np.exp(np.arange(0, dims, 2, dtype=np.float32) * (-math.log(10000.0) / dims))
    pe = np.zeros((context_len, dims), np.float32)
    pe[:, 0::2] = np.sin(pos * div)
    pe[:, 1::2] = np.cos(pos * div)
    return jnp.asarray(pe, dtype=jnp.dtype(dtype_str))


def pronoun_score_shared_fwd(query, input_pronouns, params, *,
                             dims, max_pronoun_length, fast_math=True,
                             batch_block=None, vmem_limit_bytes=None):
    """query: (B, C, D) f32 ELMo context reps; input_pronouns: (B, P) int32, 1-based, 0 = pad."""
    B, C, D = query.shape
    P = max_pronoun_length
    assert dims == D and input_pronouns.shape == (B, P)

    # ---- batch-block size: each grid step should stream ~1-4 MiB of context
    # (amortizes per-step overhead) while keeping double-buffered blocks +
    # resident tables + temps well under v7x's 64 MiB physical VMEM.
    row_bytes = C * D * 4
    if batch_block is None:
        target_bytes = 4 * 1024 * 1024
        batch_block = max(1, min(B, target_bytes // row_bytes))
    batch_block = max(1, min(int(batch_block), B))
    while B % batch_block != 0:            # largest divisor of B <= requested
        batch_block -= 1
    tb = batch_block
    G = B // tb

    # ---- glue (hoisted / cached): sinusoidal positional-encoding table ------
    pe = _positional_encoding(C, D, 'bfloat16' if fast_math else 'float32')

    # ---- fold the two tiny output linears into one (P, D) weight + scalar ---
    # exact: score = sum_{p,d} y*w1[d]*w2[p] + b1*sum(w2) + b2
    w_fold = (params['w2'].reshape(P, 1) *
              params['w1'].reshape(1, D)).astype(jnp.float32)               # (P, D)
    b_fold = (params['b1'].reshape(()) * jnp.sum(params['w2']) +
              params['b2'].reshape(())).reshape(1).astype(jnp.float32)      # (1,)

    # ids as (G, TB, P): the (TB, P) block equals the full trailing dims (no
    # block-shape alignment issue) and nothing large ever lands in SMEM.
    ids_g = input_pronouns.astype(jnp.int32).reshape(G, tb, P)

    kernel = functools.partial(_pronoun_score_kernel, dims=D, fast_math=fast_math)

    grid_spec = pltpu.PrefetchScalarGridSpec(
        num_scalar_prefetch=0,
        grid=(G,),
        in_specs=[
            pl.BlockSpec((pl.Squeezed(), tb, P), lambda i: (i, 0, 0)),   # pronoun ids
            # (TB, C, D) context block per step, auto-pipelined / double-buffered.
            # (v5e: add pipeline_mode=pl.Buffered(3) if xprof shows exposed DMA.)
            pl.BlockSpec((tb, C, D), lambda i: (i, 0, 0)),
            pl.BlockSpec((C, D), lambda i: (0, 0)),                      # pe (resident)
            pl.BlockSpec((P, D), lambda i: (0, 0)),                      # folded head weight
            pl.BlockSpec(memory_space=pltpu.MemorySpace.SMEM),           # folded head bias
        ],
        out_specs=pl.BlockSpec((pl.Squeezed(), 1, tb), lambda i: (i, 0, 0)),
    )

    if vmem_limit_bytes is None:
        # double-buffered ctx + resident pe/w + in-kernel temps (ctx_m, scores,
        # prn/rep/x/y), with headroom under v7x's 64 MiB physical VMEM and
        # above the 16/32 MiB default scoped limits on v5e/v6e.
        need = 2 * tb * row_bytes + C * D * 4 + P * D * 4
        vmem_limit_bytes = int(min(max(3 * need, 32 * 1024 * 1024),
                                   48 * 1024 * 1024))

    cost = pl.CostEstimate(
        flops=6 * B * P * C * D + 10 * B * P * D,      # gather + QK + AV + head
        transcendentals=B * P * C,                     # softmax exp
        bytes_accessed=4 * (B * C * D + C * D + P * D + B * P + B))

    out = pl.pallas_call(
        kernel,
        grid_spec=grid_spec,
        out_shape=jax.ShapeDtypeStruct((G, 1, tb), jnp.float32),
        compiler_params=pltpu.CompilerParams(
            dimension_semantics=("parallel",),         # megacore split on v7x
            vmem_limit_bytes=vmem_limit_bytes),
        cost_estimate=cost,
    )(ids_g, query, pe, w_fold, b_fold)
    return out.reshape(B, 1)


def _reference(query, input_pronouns, params, D):
    """Pure-JAX f32 reference of the same forward math (correctness check)."""
    B, C, _ = query.shape
    P = input_pronouns.shape[1]
    idx = jnp.clip(input_pronouns - 1, 0, C - 1)
    prn = jnp.where((input_pronouns > 0)[..., None],
                    jnp.take_along_axis(query, idx[..., None], axis=1), 0.0)
    pe = _positional_encoding(C, D, 'float32')
    ctx = query + pe[None]
    hi = jax.lax.Precision.HIGHEST
    attn = jax.nn.softmax(
        jnp.einsum('bpd,bcd->bpc', prn, ctx, precision=hi) / math.sqrt(D), axis=-1)
    x = prn + jnp.einsum('bpc,bcd->bpd', attn, ctx, precision=hi)
    mean = x.mean(-1, keepdims=True)
    std = jnp.sqrt(jnp.sum((x - mean) ** 2, -1, keepdims=True) / (D - 1))
    y = (x - mean) / (std + 1e-6)
    s1 = jnp.sum(y * params['w1'].reshape(1, 1, D), -1) + params['b1'].reshape(())
    return (jnp.sum(s1 * params['w2'].reshape(1, P), -1, keepdims=True)
            + params['b2'].reshape(()))


if __name__ == "__main__":
    B = 8      # bs
    C = 128    # max_context_length
    P = 8      # max_pronoun_length
    D = 128    # dimensions (ELMo rep size; small for the demo)

    key = jax.random.PRNGKey(0)
    k1, k2, k3, k4, k5 = jax.random.split(key, 5)

    # TODO(synk): the pretrained ELMo embedder (+ batch_to_ids) has no Pallas
    # equivalent; its output `query` is replaced by a deterministic stand-in.
    query = jax.random.normal(k1, (B, C, D), jnp.float32)

    # 1-based pronoun token positions with trailing zero padding.
    raw_ids = jax.random.randint(k4, (B, P), 1, C + 1)
    lens = jax.random.randint(k5, (B,), 2, P + 1)
    input_pronouns = jnp.where(jnp.arange(P)[None, :] < lens[:, None],
                               raw_ids, 0).astype(jnp.int32)

    params = {
        'w1': jax.random.normal(k2, (1, D), jnp.float32) / math.sqrt(D),  # nn.Linear(D, 1).weight
        'b1': jnp.full((1,), 0.01, jnp.float32),                          # nn.Linear(D, 1).bias
        'w2': jax.random.normal(k3, (1, P), jnp.float32) / math.sqrt(P),  # nn.Linear(P, 1).weight
        'b2': jnp.full((1,), -0.02, jnp.float32),                         # nn.Linear(P, 1).bias
    }

    ref = _reference(query, input_pronouns, params, D)

    # 1) exact-math config (f32 MXU operands, exact divides); batch_block=4
    #    forces a 2-step grid so the batch-blocked pipelining path is exercised.
    out_exact = jax.block_until_ready(pronoun_score_shared_fwd(
        query, input_pronouns, params, dims=D, max_pronoun_length=P,
        fast_math=False, batch_block=4))
    assert out_exact.shape == (B, 1), out_exact.shape
    assert jnp.allclose(out_exact, ref, atol=5e-3, rtol=5e-3), (out_exact, ref)

    # 2) production config (bf16 MXU operands + EUP approx softmax reciprocal);
    #    the looser tolerance only covers the intended bf16/approx perturbation.
    out_fast = jax.block_until_ready(pronoun_score_shared_fwd(
        query, input_pronouns, params, dims=D, max_pronoun_length=P,
        fast_math=True, batch_block=4))
    assert out_fast.shape == (B, 1), out_fast.shape
    assert jnp.allclose(out_fast, ref, atol=5e-2, rtol=5e-2), (out_fast, ref)

    print("KERNEL_OK")
</pallas_src>

<mosaic_0001>
module attributes {stable_mosaic.version = 11 : i64} {
  func.func @_pronoun_score_kernel(%arg0: i32, %arg1: memref<1x4x8xi32, #tpu.memory_space<vmem>>, %arg2: memref<4x128x128xf32, #tpu.memory_space<vmem>>, %arg3: memref<128x128xf32, #tpu.memory_space<vmem>>, %arg4: memref<8x128xf32, #tpu.memory_space<vmem>>, %arg5: memref<1xf32, #tpu.memory_space<smem>>, %arg6: memref<1x1x4xf32, #tpu.memory_space<vmem>>) attributes {dimension_semantics = [#tpu.dimension_semantics<parallel>], iteration_bounds = array<i64: 2>, scalar_prefetch = 0 : i64, scratch_operands = 0 : i64, tpu.core_type = #tpu.core_type<tc>, window_params = [{transform_indices = @transform_0, window_bounds = array<i64: 1, 4, 8>}, {transform_indices = @transform_1, window_bounds = array<i64: 4, 128, 128>}, {pipeline_mode = #tpu.pipeline_mode<synchronous>, transform_indices = @transform_2, window_bounds = array<i64: 128, 128>}, {pipeline_mode = #tpu.pipeline_mode<synchronous>, transform_indices = @transform_3, window_bounds = array<i64: 8, 128>}, {transform_indices = @transform_4, window_bounds = array<i64: 1>}, {transform_indices = @transform_5, window_bounds = array<i64: 1, 1, 4>}]} {
    %c0 = arith.constant 0 : index
    %c0_0 = arith.constant 0 : index
    %c0_1 = arith.constant 0 : index
    %0 = vector.load %arg2[%c0, %c0_0, %c0_1] : memref<4x128x128xf32, #tpu.memory_space<vmem>>, vector<4x128x128xf32>
    %c0_2 = arith.constant 0 : index
    %c0_3 = arith.constant 0 : index
    %c0_4 = arith.constant 0 : index
    %1 = vector.load %arg1[%c0_2, %c0_3, %c0_4] : memref<1x4x8xi32, #tpu.memory_space<vmem>>, vector<1x4x8xi32>
    %2 = vector.shape_cast %1 : vector<1x4x8xi32> to vector<4x8xi32>
    %3 = tpu.iota {dimensions = array<i32: 2>} : vector<4x8x128xi32>
    %4 = vector.shape_cast %2 : vector<4x8xi32> to vector<4x8x1xi32>
    %c1_i32 = arith.constant 1 : i32
    %5 = vector.broadcast %c1_i32 : i32 to vector<4x8x1xi32>
    %6 = arith.subi %4, %5 : vector<4x8x1xi32>
    %7 = vector.broadcast %6 : vector<4x8x1xi32> to vector<4x8x128xi32>
    %8 = arith.cmpi eq, %3, %7 : vector<4x8x128xi32>
    %9 = vector.shape_cast %2 : vector<4x8xi32> to vector<4x8x1xi32>
    %c0_i32 = arith.constant 0 : i32
    %10 = vector.broadcast %c0_i32 : i32 to vector<4x8x1xi32>
    %11 = arith.cmpi sgt, %9, %10 : vector<4x8x1xi32>
    %12 = vector.broadcast %11 : vector<4x8x1xi1> to vector<4x8x128xi1>
    %13 = arith.andi %8, %12 : vector<4x8x128xi1>
    %14 = arith.extui %13 : vector<4x8x128xi1> to vector<4x8x128xi32>
    %15 = arith.sitofp %14 : vector<4x8x128xi32> to vector<4x8x128xf32>
    "tpu.trace_start"() <{level = 10 : i32, message = "bpc,bcd->bpd"}> : () -> ()
    %cst = arith.constant dense<0.000000e+00> : vector<4x8x128xf32>
    %16 = tpu.matmul %15, %0, %cst {dimension_numbers = #tpu.dot_dimension_numbers<[2], [1], [1], [2], [0, 0, 0, 1, 1, 2], [0], [0]>} : vector<4x8x128xf32>, vector<4x128x128xf32>, vector<4x8x128xf32> -> vector<4x8x128xf32>
    "tpu.trace_stop"() : () -> ()
    %c0_5 = arith.constant 0 : index
    %c0_6 = arith.constant 0 : index
    %17 = vector.load %arg3[%c0_5, %c0_6] : memref<128x128xf32, #tpu.memory_space<vmem>>, vector<128x128xf32>
    %18 = vector.shape_cast %17 : vector<128x128xf32> to vector<1x128x128xf32>
    %19 = vector.broadcast %18 : vector<1x128x128xf32> to vector<4x128x128xf32>
    %20 = arith.addf %0, %19 : vector<4x128x128xf32>
    "tpu.trace_start"() <{level = 10 : i32, message = "bpd,bcd->bpc"}> : () -> ()
    %cst_7 = arith.constant dense<0.000000e+00> : vector<4x8x128xf32>
    %21 = tpu.matmul %16, %20, %cst_7 {dimension_numbers = #tpu.dot_dimension_numbers<[2], [2], [1], [1], [0, 0, 0, 1, 1, 1], [0], [0]>} : vector<4x8x128xf32>, vector<4x128x128xf32>, vector<4x8x128xf32> -> vector<4x8x128xf32>
    "tpu.trace_stop"() : () -> ()
    %cst_8 = arith.constant 0.0883883461 : f32
    %22 = vector.broadcast %cst_8 : f32 to vector<4x8x128xf32>
    %23 = arith.mulf %21, %22 : vector<4x8x128xf32>
    %cst_9 = arith.constant dense<0xFF800000> : vector<4x8xf32>
    %24 = vector.multi_reduction <maximumf>, %23, %cst_9 [2] : vector<4x8x128xf32> to vector<4x8xf32>
    %25 = vector.shape_cast %24 : vector<4x8xf32> to vector<4x8x1xf32>
    %26 = vector.broadcast %25 : vector<4x8x1xf32> to vector<4x8x128xf32>
    %27 = arith.subf %23, %26 : vector<4x8x128xf32>
    %28 = math.exp %27 : vector<4x8x128xf32>
    %cst_10 = arith.constant dense<0.000000e+00> : vector<4x8xf32>
    %29 = vector.multi_reduction <add>, %28, %cst_10 [2] : vector<4x8x128xf32> to vector<4x8xf32>
    %30 = vector.shape_cast %29 : vector<4x8xf32> to vector<4x8x1xf32>
    %31 = vector.broadcast %30 : vector<4x8x1xf32> to vector<4x8x128xf32>
    %32 = arith.divf %28, %31 : vector<4x8x128xf32>
    "tpu.trace_start"() <{level = 10 : i32, message = "bpc,bcd->bpd"}> : () -> ()
    %cst_11 = arith.constant dense<0.000000e+00> : vector<4x8x128xf32>
    %33 = tpu.matmul %32, %20, %cst_11 {dimension_numbers = #tpu.dot_dimension_numbers<[2], [1], [1], [2], [0, 0, 0, 1, 1, 2], [0], [0]>} : vector<4x8x128xf32>, vector<4x128x128xf32>, vector<4x8x128xf32> -> vector<4x8x128xf32>
    "tpu.trace_stop"() : () -> ()
    %34 = arith.addf %16, %33 : vector<4x8x128xf32>
    %cst_12 = arith.constant dense<0.000000e+00> : vector<4x8xf32>
    %35 = vector.multi_reduction <add>, %34, %cst_12 [2] : vector<4x8x128xf32> to vector<4x8xf32>
    %36 = vector.shape_cast %35 : vector<4x8xf32> to vector<4x8x1xf32>
    %cst_13 = arith.constant 1.280000e+02 : f32
    %37 = vector.broadcast %cst_13 : f32 to vector<4x8x1xf32>
    %38 = arith.divf %36, %37 : vector<4x8x1xf32>
    %39 = vector.broadcast %38 : vector<4x8x1xf32> to vector<4x8x128xf32>
    %40 = arith.subf %34, %39 : vector<4x8x128xf32>
    %41 = arith.mulf %40, %40 : vector<4x8x128xf32>
    %cst_14 = arith.constant dense<0.000000e+00> : vector<4x8xf32>
    %42 = vector.multi_reduction <add>, %41, %cst_14 [2] : vector<4x8x128xf32> to vector<4x8xf32>
    %43 = vector.shape_cast %42 : vector<4x8xf32> to vector<4x8x1xf32>
    %cst_15 = arith.constant 0.00787401571 : f32
    %44 = vector.broadcast %cst_15 : f32 to vector<4x8x1xf32>
    %45 = arith.mulf %43, %44 : vector<4x8x1xf32>
    %46 = vector.broadcast %38 : vector<4x8x1xf32> to vector<4x8x128xf32>
    %47 = arith.subf %34, %46 : vector<4x8x128xf32>
    %48 = math.sqrt %45 : vector<4x8x1xf32>
    %cst_16 = arith.constant 9.99999997E-7 : f32
    %49 = vector.broadcast %cst_16 : f32 to vector<4x8x1xf32>
    %50 = arith.addf %48, %49 : vector<4x8x1xf32>
    %51 = vector.broadcast %50 : vector<4x8x1xf32> to vector<4x8x128xf32>
    %52 = arith.divf %47, %51 : vector<4x8x128xf32>
    %c0_17 = arith.constant 0 : index
    %c0_18 = arith.constant 0 : index
    %53 = vector.load %arg4[%c0_17, %c0_18] : memref<8x128xf32, #tpu.memory_space<vmem>>, vector<8x128xf32>
    %54 = vector.shape_cast %53 : vector<8x128xf32> to vector<1x8x128xf32>
    %55 = vector.broadcast %54 : vector<1x8x128xf32> to vector<4x8x128xf32>
    %56 = arith.mulf %52, %55 : vector<4x8x128xf32>
    %cst_19 = arith.constant dense<0.000000e+00> : vector<4x8xf32>
    %57 = vector.multi_reduction <add>, %56, %cst_19 [2] : vector<4x8x128xf32> to vector<4x8xf32>
    %cst_20 = arith.constant dense<0.000000e+00> : vector<4xf32>
    %58 = vector.multi_reduction <add>, %57, %cst_20 [1] : vector<4x8xf32> to vector<4xf32>
    %c0_21 = arith.constant 0 : index
    %59 = memref.load %arg5[%c0_21] : memref<1xf32, #tpu.memory_space<smem>>
    %60 = vector.broadcast %59 : f32 to vector<4xf32>
    %61 = arith.addf %58, %60 : vector<4xf32>
    %62 = vector.shape_cast %61 : vector<4xf32> to vector<1x4xf32>
    %c0_22 = arith.constant 0 : index
    %c0_23 = arith.constant 0 : index
    %c0_24 = arith.constant 0 : index
    %63 = vector.load %arg6[%c0_22, %c0_23, %c0_24] : memref<1x1x4xf32, #tpu.memory_space<vmem>>, vector<1x1x4xf32>
    %64 = vector.shape_cast %63 : vector<1x1x4xf32> to vector<1x4xf32>
    %65 = vector.shape_cast %62 : vector<1x4xf32> to vector<1x1x4xf32>
    tpu.vector_store %arg6[%c0_22, %c0_23, %c0_24], %65 {strides = array<i32>} : memref<1x1x4xf32, #tpu.memory_space<vmem>>, vector<1x1x4xf32>,
    return
  }
  func.func @transform_0(%arg0: i32) -> (i32, i32, i32) {
    %c0_i32 = arith.constant 0 : i32
    %c0_i32_0 = arith.constant 0 : i32
    %c0_i32_1 = arith.constant 0 : i32
    return %arg0, %c0_i32, %c0_i32_0 : i32, i32, i32
  }
  func.func @transform_1(%arg0: i32) -> (i32, i32, i32) {
    %c0_i32 = arith.constant 0 : i32
    %c0_i32_0 = arith.constant 0 : i32
    %c0_i32_1 = arith.constant 0 : i32
    return %arg0, %c0_i32, %c0_i32_0 : i32, i32, i32
  }
  func.func @transform_2(%arg0: i32) -> (i32, i32) {
    %c0_i32 = arith.constant 0 : i32
    %c0_i32_0 = arith.constant 0 : i32
    %c0_i32_1 = arith.constant 0 : i32
    return %c0_i32, %c0_i32_0 : i32, i32
  }
  func.func @transform_3(%arg0: i32) -> (i32, i32) {
    %c0_i32 = arith.constant 0 : i32
    %c0_i32_0 = arith.constant 0 : i32
    %c0_i32_1 = arith.constant 0 : i32
    return %c0_i32, %c0_i32_0 : i32, i32
  }
  func.func @transform_4(%arg0: i32) -> i32 {
    %c0_i32 = arith.constant 0 : i32
    %c0_i32_0 = arith.constant 0 : i32
    return %c0_i32 : i32
  }
  func.func @transform_5(%arg0: i32) -> (i32, i32, i32) {
    %c0_i32 = arith.constant 0 : i32
    %c0_i32_0 = arith.constant 0 : i32
    %c0_i32_1 = arith.constant 0 : i32
    return %arg0, %c0_i32, %c0_i32_0 : i32, i32, i32
  }
}

</mosaic_0001>

<bundles_post_ra>
// kernel: tpu_custom_call.1
= control target key start
LH: loop header
LB: loop body
LE: loop exit
PB: predicated region body
PF: predicated region fallthrough
CT: control target
= control target key end

     0   :  { %s3826_s0 = inlined_call_operand.hbm [shape: s32[2,4,8], index: 0, kind: input, shape index: {}]   ;;  %s3827_s1 = inlined_call_operand.hbm [shape: f32[8,128,128], index: 1, kind: input, shape index: {}]   ;;  %s3828_s2 = inlined_call_operand.hbm [shape: f32[128,128], index: 2, kind: input, shape index: {}]   ;;  %s3829_s3 = inlined_call_operand.vmem [shape: f32[8,128], index: 3, kind: input, shape index: {}]   ;;  %s3830_s4 = inlined_call_operand.<no memory space> [shape: f32[1], index: 4, kind: input, shape index: {}]   ;;  %s3831_s5 = inlined_call_operand.hbm [shape: f32[2,1,4], index: 5, kind: output, shape index: {}]  }
   0x1   :  { %10 = sst [smem:[#allocation2]] %s3830_s4 }
   0x2   :  { %11 = vsyncpa [#allocation4], 0 }
   0x3   :  { %13 = vsyncpa [#allocation4 + $0x1], 0 }
   0x4   :  { %14 = vsyncpa [#allocation7], 0 }
   0x5   :  { %16 = vsyncpa [#allocation7 + $0x1], 0 }
   0x6   :  { %17 = vsyncpa [#allocation5], 0 }
   0x7   :  { %19 = vsyncpa [#allocation5 + $0x1], 0  ;;  %s2876_s20 = smov 0   ;;  %s2878_s21 = smov 0  }
   0x8   :  { %s2880_s22 = smov 0   ;;  %s2882_s23 = smov 0  }
   0x9 LB: > { %s2897_s4 = sadd.s32 4294967295, %s2831_s23   ;;  %s1626_s24 = sadd.s32 4294967294, %s2831_s23   ;;  %s2831_s23 = sphi %s2882_s23, %s3902_s23   ;;  %s2827_s22 = sphi %s2880_s22, %s3901_s22   ;;  %s2823_s21 = sphi %s2878_s21, %s3900_s21   ;;  %s2819_s20 = sphi %s2876_s20, %s3899_s20  }
   0xa   : > { %p45_p0 = scmp.ne.s32.totalorder %s2823_s21, %s2819_s20  ;;  %p3832_p1 = scmp.eq.s32.totalorder %s2897_s4, 0 }
   0xb   : > { %p164_p3 = scmp.eq.s32.totalorder %s1626_s24, 1  ;;  %p1627_p5 = scmp.ge.s32.totalorder %s2831_s23, 1 }
   0xc   : > { %p2906_p4 = por %p3832_p1, %p45_p0  ;;  %p171_p7 = scmp.lt.s32.totalorder %s2831_s23, 3 }
   0xd   : > { %p2911_p6 = por %p164_p3, %p45_p0  ;;  %s2833_s28 = smov [#allocation8]  }
   0xe   : > { %s3859_s25 = scalar_select %p2906_p4, 1, 0 }
   0xf   : > { %s3860_s26 = scalar_select %p2911_p6, 1, 0 }
  0x10   : > { %p2916_p8 = pnand %p1627_p5, %p171_p7  ;;  %s183_s29 = sshll.u32 %s2833_s28, 4  ;;  %s2920_s29 = int_to_ptr.vmem [resolvable:$true] %s183_s29 }
  0x11   : > { %s2932_s6 = sadd.s32 1, %s2831_s23   ;;  %s32_s7 = sadd.s32 1, %s2827_s22 }
  0x12   : > { %s3861_s27 = scalar_select %p2916_p8, 1, 0 }
  0x13   : > { %p2579_p9 = pneg %p2916_p8  ;;  %s29_s8 = ssub.s32 %s2831_s23, %s2932_s6 }
  0x14   : > { %s2669_s11 = scalar_lea.hbm %s3828_s2, 2048 }
  0x15   : > { %p2927_p11 = pnand %p2579_p9, %p3832_p1  ;;  %p2670_p12 = scmp.ne.s32.totalorder %s3828_s2, %s2669_s11 }
  0x16   : > { %p2676_p5 = scmp.lt.u32.totalorder %s2669_s11, %s3828_s2 }
  0x17   : > { %p2671_p13 = pneg %p2927_p11 }
  0x19   : > { %p2672_p0 = pnand %p2671_p13, %p2670_p12 }
  0x1b   : > { %p2673_p3 = pneg %p2672_p0 }
  0x1d   : > { %p2678_p7 = pnand %p2676_p5, %p2673_p3 }
  0x1f   : > { %2681 = shalt.err (!%p2678_p7)
}
  0x20   : > { %s2682_s16 = scalar_lea.vmem %s2920_s29, 2048  ;;  %p2690_p2 = scmp.lt.s32.totalorder %s2920_s29, %s2920_s29 }
  0x21   : > { %p2683_p9 = scmp.ne.s32.totalorder %s2920_s29, %s2682_s16  ;;  %p2691_p6 = scmp.lt.s32.totalorder %s2682_s16, %s2682_s16 }
  0x23   : > { %p2685_p10 = pnand %p2683_p9, %p2671_p13  ;;  %p2692_p4 = por %p2691_p6, %p2690_p2 }
  0x25   : > { %p2686_p1 = pneg %p2685_p10 }
  0x27   : > { %p2693_p8 = pnand %p2692_p4, %p2686_p1 }
  0x29   : > { %2696 = shalt.err (!%p2693_p8)
}
  0x2a   : > { %s3835_s17 = smov 128   ;;  %s3836_s18 = smov 8  }
  0x2b   : > { %2582 = dma.hbm_to_vmem [thread:$0]  (!%p2927_p11), %s3828_s2, 2048, %s2920_s29, [#allocation7], %s3835_s17, %s3835_s17, %s3836_s18  }
  0x2c   : > { %p30_p1 = scmp.eq.s32.totalorder %s29_s8, 0  ;;  %p39_p2 = scmp.ne.s32.totalorder %s2827_s22, %s2823_s21 }
  0x2d   : > { %p40_p4 = scmp.eq.s32.totalorder %s2831_s23, 0  ;;  %p2595_p6 = scmp.lt.s32.totalorder %s2831_s23, 2 }
  0x2e   : > { %s2966_s28 = scalar_select %p30_p1, %s2827_s22, %s32_s7  }
  0x2f   : > { %p41_p8 = por %p40_p4, %p39_p2  ;;  %p3863_p10 = scmp.eq.s32.totalorder %s2897_s4, 1 }
  0x30   : > { %s2975_s30 = sand.u32 1, %s2827_s22   ;;  %s1631_s10 = sshll.u32 %s2831_s23, 6 }
  0x31   : > { %p2970_p12 = por %p3863_p10, %p39_p2  ;;  %s1630_s11 = sshll.u32 %s2975_s30, 2 }
  0x32   : > { %s2982_s12 = scalar_lea.hbm %s3826_s0, %s1631_s10  ;;  %s207_s7 = scalar_lea.vmem [#allocation3], %s1630_s11 }
  0x33   : > { %s214_s13 = sshll.u32 %s207_s7, 4  ;;  %p2984_p11 = pnand %p2595_p6, %p41_p8  ;;  %s2988_s13 = int_to_ptr.vmem [resolvable:$true] %s214_s13 }
  0x34   : > { %s1632_s15 = sshll.u32 %s2975_s30, 9  ;;  %s204_s16 = scalar_lea.sflag [#allocation4], %s2975_s30 }
  0x35   : > { %s2697_s19 = scalar_lea.hbm %s2982_s12, 64  ;;  %p2699_p0 = pneg %p2984_p11 }
  0x36   : > { %p2698_p13 = scmp.ne.s32.totalorder %s2982_s12, %s2697_s19  ;;  %s2702_s11 = scalar_lea.hbm %s3826_s0, 128 }
  0x37   : > { %p2703_p7 = scmp.lt.u32.totalorder %s2982_s12, %s3826_s0  ;;  %p2704_p9 = scmp.lt.u32.totalorder %s2702_s11, %s2697_s19 }
  0x38   : > { %p2700_p3 = pnand %p2699_p0, %p2698_p13  ;;  %p2706_p2 = scmp.lt.u32.totalorder %s2697_s19, %s2982_s12 }
  0x39   : > { %p2705_p1 = por %p2704_p9, %p2703_p7 }
  0x3a   : > { %p2701_p5 = pneg %p2700_p3 }
  0x3b   : > { %p2707_p4 = por %p2706_p2, %p2705_p1 }
  0x3d   : > { %p2708_p6 = pnand %p2707_p4, %p2701_p5 }
  0x3f   : > { %2711 = shalt.err (!%p2708_p6)
}
  0x40   : > { %s2712_s7 = scalar_lea.vmem %s2988_s13, 64  ;;  %s2836_s24 = smov [#allocation3]  }
  0x41   : > { %p2713_p8 = scmp.ne.s32.totalorder %s2988_s13, %s2712_s7  ;;  %s2717_s10 = sshll.u32 %s2836_s24, 4  ;;  %s2718_s10 = int_to_ptr.vmem [resolvable:$false] %s2717_s10 }
  0x42   : > { %s2719_s29 = scalar_lea.vmem %s2718_s10, 128  ;;  %p2720_p3 = scmp.lt.s32.totalorder %s2988_s13, %s2718_s10 }
  0x43   : > { %p2715_p10 = pnand %p2713_p8, %p2699_p0  ;;  %p2721_p7 = scmp.lt.s32.totalorder %s2719_s29, %s2712_s7 }
  0x45   : > { %p2716_p13 = pneg %p2715_p10  ;;  %p2722_p9 = por %p2721_p7, %p2720_p3 }
  0x47   : > { %p2723_p1 = pnand %p2722_p9, %p2716_p13 }
  0x49   : > { %2726 = shalt.err (!%p2723_p1)
}
  0x4a   : > { %2586 = dma.hbm_to_vmem [thread:$0]  (!%p2984_p11), %s2982_s12, 64, %s2988_s13, %s204_s16  }
  0x4b   : > { %s225_s19 = scalar_lea.vmem [#allocation6], %s1632_s15  ;;  %s221_s8 = sand.u32 1, %s2831_s23  }
  0x4c   : > { %s233_s11 = sshll.u32 %s225_s19, 4  ;;  %s1656_s24 = sshll.u32 %s2831_s23, 13  ;;  %s3020_s11 = int_to_ptr.vmem [resolvable:$true] %s233_s11 }
  0x4d   : > { %s3026_s29 = scalar_lea.hbm %s3827_s1, %s1656_s24  ;;  %s3028_s17 = scalar_lea.sflag [#allocation7], %s221_s8 }
  0x4e   : > { %s2727_s18 = scalar_lea.hbm %s3026_s29, 8192  ;;  %s2732_s13 = scalar_lea.hbm %s3827_s1, 16384 }
  0x4f   : > { %p2728_p5 = scmp.ne.s32.totalorder %s3026_s29, %s2727_s18  ;;  %p2733_p6 = scmp.lt.u32.totalorder %s3026_s29, %s3827_s1 }
  0x50   : > { %p2734_p8 = scmp.lt.u32.totalorder %s2732_s13, %s2727_s18  ;;  %p2736_p13 = scmp.lt.u32.totalorder %s2727_s18, %s3026_s29 }
  0x51   : > { %p2730_p2 = pnand %p2728_p5, %p2699_p0 }
  0x52   : > { %p2735_p10 = por %p2734_p8, %p2733_p6 }
  0x53   : > { %p2731_p4 = pneg %p2730_p2 }
  0x54   : > { %p2737_p3 = por %p2736_p13, %p2735_p10 }
  0x56   : > { %p2738_p7 = pnand %p2737_p3, %p2731_p4 }
  0x58   : > { %2741 = shalt.err (!%p2738_p7)
}
  0x59   : > { %s2742_s19 = scalar_lea.vmem %s3020_s11, 8192  ;;  %s2837_s8 = smov [#allocation6]  }
  0x5a   : > { %p2743_p9 = scmp.ne.s32.totalorder %s3020_s11, %s2742_s19  ;;  %s2747_s24 = sshll.u32 %s2837_s8, 4  ;;  %s2748_s24 = int_to_ptr.vmem [resolvable:$false] %s2747_s24 }
  0x5b   : > { %s2749_s7 = scalar_lea.vmem %s2748_s24, 16384  ;;  %p2750_p2 = scmp.lt.s32.totalorder %s3020_s11, %s2748_s24 }
  0x5c   : > { %p2745_p1 = pnand %p2743_p9, %p2699_p0  ;;  %p2751_p6 = scmp.lt.s32.totalorder %s2749_s7, %s2742_s19 }
  0x5e   : > { %p2746_p5 = pneg %p2745_p1  ;;  %p2752_p8 = por %p2751_p6, %p2750_p2 }
  0x60   : > { %p2753_p10 = pnand %p2752_p8, %p2746_p5 }
  0x62   : > { %2756 = shalt.err (!%p2753_p10)
}
  0x63   : > { %s3866_s18 = smov 8   ;;  %s3867_s10 = smov 128  }
  0x64   : > { %2589 = dma.hbm_to_vmem [thread:$0]  (!%p2984_p11), %s3026_s29, 8192, %s3020_s11, %s3028_s17, %s3867_s10, %s3867_s10, %s3866_s18  }
  0x65   : > { %p3868_p0 = scmp.ne.s32.totalorder %s3861_s27, 0 }
  0x67   : > { %245 = sbr.rel (%p3868_p0) target bundleno = 1897 (0x769), region = 40 }
  0x6e   : > { %s3060_s30 = sand.u32 1, %s2823_s21   ;;  %p3869_p4 = scmp.ne.s32.totalorder %s3859_s25, 0 }
  0x6f   : > { %s1637_s12 = sshll.u32 %s3060_s30, 2  ;;  %s248_s13 = scalar_lea.sflag [#allocation4], %s3060_s30 }
  0x70   : > { %s251_s15 = scalar_lea.vmem [#allocation3], %s1637_s12 }
  0x71   : > { %2802 = dma.done.wait (%p3869_p4), %s248_s13, 64  }
  0x72   : > { %2804 = vsyncadd (%p3869_p4), %s248_s13, 4294967232  ;;  %s256_s17 = sand.u32 1, %s2897_s4   ;;  %s1638_s27 = sshll.u32 %s3060_s30, 9 }
  0x73   : > { %s257_s14 = scalar_lea.sflag [#allocation7], %s256_s17  ;;  %s3070_s11 = scalar_lea.vmem [#allocation6], %s1638_s27 }
  0x74   : > { %2806 = dma.done.wait (%p3869_p4), %s257_s14, 8192  }
  0x75   : > { %2808 = vsyncadd (%p3869_p4), %s257_s14, 4294959104  ;;  %p3870_p11 = scmp.eq.s32.totalorder %s2897_s4, 0 }
  0x77   : > { %2810 = dma.done.wait (%p3870_p11), [#allocation7], 2048   ;;  %p3871_p13 = pmov %p3870_p11 }
  0x78   : > { %v361_v0 = vlaneseq  ;;  %v3857_v1 = vmov 0.0|0.0   ;;  %vm2839_vm0 = vmmov 0   ;;  %v3837_v3 = vmov 0.0   ;;  %v360_v8 = vld [vmem:[%s251_s15] sm:$0xf]  ;;  %v296_v9 = vld [vmem:[%s3070_s11] sm:$0xff] }
  0x79   : > { %2812 = vsyncadd (%p3871_p13), [#allocation7], 4294965248  ;;  %2281 = vmatprep.subr.bf16.mxu0 %v3857_v1  ;;  %2305 = vmatprep.subr.bf16.mxu1 %v3857_v1  ;;  %v297_v10 = vld [vmem:[%s3070_s11 + $0x8] sm:$0xff]  ;;  %v3095_v13 = vld [vmem:[#allocation8] sm:$0xff]  ;;  %s1504_s16 = sld [smem:[#allocation2]]  ;;  %s1652_s19 = sshll.u32 %s2897_s4, 4 }
  0x7a   : > { %v3083_v2 = vshrl.u32 %v361_v0, 7  ;;  %1893 = vmatprep.mubr.msk.f32.mxu0 %vm2839_vm0, %v3837_v3  ;;  %1928 = vmatprep.mubr.msk.f32.mxu1 %vm2839_vm0, %v3837_v3  ;;  %v3097_v14 = vld [vmem:[#allocation8 + $0x8] sm:$0xff]  ;;  %v3100_v15 = vld [vmem:[%s3070_s11 + $0x10] sm:$0xff]  ;;  %v2282_v16 = vpack.c.bf16 %v297_v10, %v296_v9  ;;  %v719_v17 = vadd.f32 %v3095_v13, %v296_v9  ;;  %v3105_v19 = vld [vmem:[%s3070_s11 + $0x18] sm:$0xff]  ;;  %s294_s8 = scalar_lea.vmem [#allocation9], %s3060_s30  ;;  %s3782_s10 = scalar_lea.hbm %s3831_s5, %s1652_s19 }
  0x7b   : > { %v720_v18 = vadd.f32 %v3097_v14, %v297_v10  ;;  %v2285_v22 = vpack.c.bf16 %v3105_v19, %v3100_v15  ;;  %v312_v23 = vld [vmem:[%s3070_s11 + $0x80] sm:$0xff]  ;;  %v313_v24 = vld [vmem:[%s3070_s11 + $0x88] sm:$0xff]  ;;  %v3123_v31 = vld [vmem:[%s3070_s11 + $0x90] sm:$0xff]  ;;  %s1528_s24 = sshll.u32 %s294_s8, 4  ;;  %s1516_s12 = scalar_lea.sflag [#allocation5], %s3060_s30  ;;  %s3784_s24 = int_to_ptr.vmem [resolvable:$true] %s1528_s24 }
  0x7c   : > { %3872 = vst [vmem:[#allocation14_spill] sm:$0xff] %v3083_v2  ;;  %v365_v4 = vsub.s32 0, %v3083_v2  ;;  %v379_v5 = vsub.s32 2, %v3083_v2  ;;  %v372_v6 = vsub.s32 1, %v3083_v2  ;;  %v386_v7 = vsub.s32 3, %v3083_v2  ;;  %2283 = vmatpush3.bf16.msra.mxu0 %v2282_v16  ;;  %v3116_v29 = vld [vmem:[%s3070_s11 + $0x20] sm:$0xff] }
  0x7d   : > { %v3111_v25 = vpack.c.bf16 %v720_v18, %v719_v17  ;;  %v2306_v26 = vpack.c.bf16 %v313_v24, %v312_v23  ;;  %v735_v27 = vadd.f32 %v3095_v13, %v312_v23  ;;  %v736_v28 = vadd.f32 %v3097_v14, %v313_v24  ;;  %2284 = vmatprep.subr.bf16.mxu0 %v3857_v1  ;;  %v3120_v30 = vld [vmem:[%s3070_s11 + $0x28] sm:$0xff]  ;;  %v3126_v32 = vld [vmem:[%s3070_s11 + $0x98] sm:$0xff]  ;;  %v3133_v35 = vld [vmem:[%s3070_s11 + $0xa0] sm:$0xff]  ;;  %s2757_s13 = scalar_lea.vmem %s3784_s24, 16  ;;  %s2842_s4 = smov [#allocation9]  }
  0x7e   : > { %v366_v11 = vrot.slane %v360_v8, %v365_v4  ;;  %v380_v12 = vrot.slane %v360_v8, %v379_v5  ;;  %v373_v20 = vrot.slane %v360_v8, %v372_v6  ;;  %v387_v21 = vrot.slane %v360_v8, %v386_v7  ;;  %v3136_v36 = vld [vmem:[%s3070_s11 + $0xa8] sm:$0xff]  ;;  %v3143_v38 = vld [vmem:[%s3070_s11 + $0x30] sm:$0xff]  ;;  %v3146_v39 = vld [vmem:[%s3070_s11 + $0x38] sm:$0xff]  ;;  %p2758_p3 = scmp.ne.s32.totalorder %s3784_s24, %s2757_s13  ;;  %s2761_s15 = sshll.u32 %s2842_s4, 4  ;;  %s2762_s15 = int_to_ptr.vmem [resolvable:$false] %s2761_s15 }
  0x7f   : > { %2307 = vmatpush3.bf16.msra.mxu1 %v2306_v26  ;;  %v3128_v33 = vpack.c.bf16 %v736_v28, %v735_v27  ;;  %v2309_v34 = vpack.c.bf16 %v3126_v32, %v3123_v31  ;;  %v2288_v37 = vpack.c.bf16 %v3120_v30, %v3116_v29  ;;  %v2312_v40 = vpack.c.bf16 %v3136_v36, %v3133_v35  ;;  %v3152_v41 = vld [vmem:[%s3070_s11 + $0xb0] sm:$0xff]  ;;  %v3155_v42 = vld [vmem:[%s3070_s11 + $0xb8] sm:$0xff]  ;;  %v3161_v44 = vld [vmem:[%s3070_s11 + $0x40] sm:$0xff]  ;;  %s2763_s17 = scalar_lea.vmem %s2762_s15, 32  ;;  %p2764_p1 = scmp.lt.s32.totalorder %s3784_s24, %s2762_s15 }
  0x80   : > { %368 = vbcast.lane.b32.xlu0 %v366_v11, 256  ;;  %382 = vbcast.lane.b32.xlu1 %v380_v12, 256  ;;  %v2291_v43 = vpack.c.bf16 %v3146_v39, %v3143_v38  ;;  %v3164_v45 = vld [vmem:[%s3070_s11 + $0x48] sm:$0xff]  ;;  %v2315_v46 = vpack.c.bf16 %v3155_v42, %v3152_v41  ;;  %v3170_v47 = vld [vmem:[%s3070_s11 + $0xc0] sm:$0xff]  ;;  %v3179_v50 = vld [vmem:[%s3070_s11 + $0x50] sm:$0xff]  ;;  %p2759_p7 = pnand %p2758_p3, %p2970_p12  ;;  %p2765_p5 = scmp.lt.s32.totalorder %s2763_s17, %s2757_s13 }
  0x81   : > { %2286 = vmatpush3.bf16.msra.mxu0 %v2285_v22  ;;  %2308 = vmatprep.subr.bf16.mxu1 %v3857_v1  ;;  %v3173_v48 = vld [vmem:[%s3070_s11 + $0xc8] sm:$0xff]  ;;  %v2294_v49 = vpack.c.bf16 %v3164_v45, %v3161_v44  ;;  %v3182_v51 = vld [vmem:[%s3070_s11 + $0x58] sm:$0xff]  ;;  %v3188_v53 = vld [vmem:[%s3070_s11 + $0xd0] sm:$0xff] }
  0x82   : > { %2287 = vmatprep.subr.bf16.mxu0 %v3857_v1  ;;  %v2318_v52 = vpack.c.bf16 %v3173_v48, %v3170_v47  ;;  %v3191_v54 = vld [vmem:[%s3070_s11 + $0xd8] sm:$0xff]  ;;  %v2297_v55 = vpack.c.bf16 %v3182_v51, %v3179_v50  ;;  %v3197_v56 = vld [vmem:[%s3070_s11 + $0x60] sm:$0xff]  ;;  %v3200_v57 = vld [vmem:[%s3070_s11 + $0x68] sm:$0xff]  ;;  %p2760_p9 = pneg %p2759_p7  ;;  %p2766_p2 = por %p2765_p5, %p2764_p1 }
  0x83   : > { %2310 = vmatpush3.bf16.msra.mxu1 %v2309_v34  ;;  %v2321_v58 = vpack.c.bf16 %v3191_v54, %v3188_v53  ;;  %v3206_v59 = vld [vmem:[%s3070_s11 + $0xe0] sm:$0xff]  ;;  %v3209_v60 = vld [vmem:[%s3070_s11 + $0xe8] sm:$0xff]  ;;  %v2300_v61 = vpack.c.bf16 %v3200_v57, %v3197_v56  ;;  %v3215_v62 = vld [vmem:[%s3070_s11 + $0x70] sm:$0xff] }
  0x84   : > { %375 = vbcast.lane.b32.xlu0 %v373_v20, 256  ;;  %389 = vbcast.lane.b32.xlu1 %v387_v21, 256  ;;  %v3218_v63 = vld [vmem:[%s3070_s11 + $0x78] sm:$0xff]  ;;  %v2324_v4 = vpack.c.bf16 %v3209_v60, %v3206_v59  ;;  %v3224_v5 = vld [vmem:[%s3070_s11 + $0xf0] sm:$0xff]  ;;  %v3251_v20 = vld [vmem:[#allocation8 + $0x20] sm:$0xff]  ;;  %p2767_p6 = pnand %p2766_p2, %p2760_p9 }
  0x85   : > { %2311 = vmatprep.subr.bf16.mxu1 %v3857_v1  ;;  %2289 = vmatpush3.bf16.msra.mxu0 %v2288_v37  ;;  %v3227_v6 = vld [vmem:[%s3070_s11 + $0xf8] sm:$0xff]  ;;  %v2303_v7 = vpack.c.bf16 %v3218_v63, %v3215_v62  ;;  %v3231_v8 = vld [vmem:[#allocation8 + $0x10] sm:$0xff]  ;;  %v739_v23 = vadd.f32 %v3251_v20, %v3133_v35  ;;  %v3285_v37 = vld [vmem:[#allocation8 + $0x48] sm:$0xff] }
  0x86   : > { %2290 = vmatprep.subr.bf16.mxu0 %v3857_v1  ;;  %v3233_v9 = vld [vmem:[#allocation8 + $0x18] sm:$0xff]  ;;  %v2327_v10 = vpack.c.bf16 %v3227_v6, %v3224_v5  ;;  %v721_v11 = vadd.f32 %v3231_v8, %v3100_v15  ;;  %v737_v16 = vadd.f32 %v3231_v8, %v3123_v31  ;;  %v3253_v15 = vld [vmem:[#allocation8 + $0x28] sm:$0xff]  ;;  %v3267_v27 = vld [vmem:[#allocation8 + $0x30] sm:$0xff] }
  0x87   : > { %2313 = vmatpush3.bf16.msra.mxu1 %v2312_v40  ;;  %v722_v12 = vadd.f32 %v3233_v9, %v3105_v19  ;;  %v738_v17 = vadd.f32 %v3233_v9, %v3126_v32  ;;  %v723_v19 = vadd.f32 %v3251_v20, %v3116_v29  ;;  %v724_v21 = vadd.f32 %v3253_v15, %v3120_v30  ;;  %v3269_v28 = vld [vmem:[#allocation8 + $0x38] sm:$0xff] }
  0x88   : > { %2314 = vmatprep.subr.bf16.mxu1 %v3857_v1  ;;  %v740_v24 = vadd.f32 %v3253_v15, %v3136_v36  ;;  %v725_v29 = vadd.f32 %v3267_v27, %v3143_v38  ;;  %v726_v30 = vadd.f32 %v3269_v28, %v3146_v39  ;;  %v741_v32 = vadd.f32 %v3267_v27, %v3152_v41  ;;  %v3283_v36 = vld [vmem:[#allocation8 + $0x40] sm:$0xff] }
  0x89   : > { %2292 = vmatpush3.bf16.msra.mxu0 %v2291_v43  ;;  %v3249_v18 = vpack.c.bf16 %v722_v12, %v721_v11  ;;  %v3259_v22 = vpack.c.bf16 %v738_v17, %v737_v16  ;;  %v3265_v26 = vpack.c.bf16 %v724_v21, %v723_v19  ;;  %v742_v34 = vadd.f32 %v3269_v28, %v3155_v42  ;;  %v3333_v11 = vld [vmem:[#allocation8 + $0x78] sm:$0xff]  ;;  %v3353_v19 = vld [vmem:[%s3070_s11 + $0x100] sm:$0xff] }
  0x8a   : > { %2293 = vmatprep.subr.bf16.mxu0 %v3857_v1  ;;  %v3275_v31 = vpack.c.bf16 %v740_v24, %v739_v23  ;;  %v3281_v35 = vpack.c.bf16 %v726_v30, %v725_v29  ;;  %v727_v38 = vadd.f32 %v3283_v36, %v3161_v44  ;;  %v728_v39 = vadd.f32 %v3285_v37, %v3164_v45  ;;  %v3361_v24 = vld [vmem:[%s3070_s11 + $0x110] sm:$0xff]  ;;  %v3371_v29 = vld [vmem:[%s3070_s11 + $0x188] sm:$0xff] }
  0x8b   : > { %2316 = vmatpush3.bf16.msra.mxu1 %v2315_v46  ;;  %v3291_v40 = vpack.c.bf16 %v742_v34, %v741_v32  ;;  %v743_v41 = vadd.f32 %v3283_v36, %v3170_v47  ;;  %v744_v42 = vadd.f32 %v3285_v37, %v3173_v48  ;;  %v3299_v46 = vld [vmem:[#allocation8 + $0x50] sm:$0xff]  ;;  %3877 = vst [vmem:[#allocation19_spill] sm:$0xff] %v3333_v11  ;;  %v3839_v34 = vmov 1.0  }
  0x8c   : > { %2317 = vmatprep.subr.bf16.mxu1 %v3857_v1  ;;  %v3297_v43 = vpack.c.bf16 %v728_v39, %v727_v38  ;;  %v729_v44 = vadd.f32 %v3299_v46, %v3179_v50  ;;  %v745_v47 = vadd.f32 %v3299_v46, %v3188_v53 }
  0x8d   : > { %2295 = vmatpush3.bf16.msra.mxu0 %v2294_v49  ;;  %v3301_v49 = vld [vmem:[#allocation8 + $0x58] sm:$0xff] }
  0x8e   : > { %2296 = vmatprep.subr.bf16.mxu0 %v3857_v1  ;;  %3873 = vst [vmem:[#allocation15_spill] sm:$0xff] %v3301_v49  ;;  %v730_v45 = vadd.f32 %v3301_v49, %v3182_v51  ;;  %v746_v48 = vadd.f32 %v3301_v49, %v3191_v54  ;;  %v3482_v49 = vld [vmem:[%s3070_s11 + $0x1e0] sm:$0xff] }
  0x8f   : > { %2319 = vmatpush3.bf16.msra.mxu1 %v2318_v52  ;;  %v3307_v52 = vpack.c.bf16 %v744_v42, %v743_v41  ;;  %v3379_v41 = vld [vmem:[%s3070_s11 + $0x120] sm:$0xff]  ;;  %v3386_v42 = vld [vmem:[%s3070_s11 + $0x128] sm:$0xff] }
  0x90   : > { %2320 = vmatprep.subr.bf16.mxu1 %v3857_v1 }
  0x91   : > { %2298 = vmatpush3.bf16.msra.mxu0 %v2297_v55  ;;  %v3313_v55 = vpack.c.bf16 %v730_v45, %v729_v44  ;;  %v3389_v44 = vld [vmem:[%s3070_s11 + $0x190] sm:$0xff]  ;;  %v3392_v45 = vld [vmem:[%s3070_s11 + $0x198] sm:$0xff] }
  0x92   : > { %2299 = vmatprep.subr.bf16.mxu0 %v3857_v1 }
  0x93   : > { %2322 = vmatpush3.bf16.msra.mxu1 %v2321_v58  ;;  %v3315_v58 = vld [vmem:[#allocation8 + $0x60] sm:$0xff] }
  0x94   : > { %2323 = vmatprep.subr.bf16.mxu1 %v3857_v1  ;;  %3874 = vst [vmem:[#allocation16_spill] sm:$0xff] %v3315_v58  ;;  %v731_v50 = vadd.f32 %v3315_v58, %v3197_v56  ;;  %v747_v53 = vadd.f32 %v3315_v58, %v3206_v59  ;;  %v3479_v58 = vld [vmem:[%s3070_s11 + $0x178] sm:$0xff] }
  0x95   : > { %2301 = vmatpush3.bf16.msra.mxu0 %v2300_v61  ;;  %v3317_v61 = vld [vmem:[#allocation8 + $0x68] sm:$0xff] }
  0x96   : > { %2302 = vmatprep.subr.bf16.mxu0 %v3857_v1  ;;  %3875 = vst [vmem:[#allocation17_spill] sm:$0xff] %v3317_v61  ;;  %v732_v51 = vadd.f32 %v3317_v61, %v3200_v57  ;;  %v748_v54 = vadd.f32 %v3317_v61, %v3209_v60  ;;  %v734_v57 = vadd.f32 %v3333_v11, %v3218_v63  ;;  %v3356_v63 = vld [vmem:[%s3070_s11 + $0x108] sm:$0xff] }
  0x97   : > { %2325 = vmatpush3.bf16.msra.mxu1 %v2324_v4  ;;  %v3323_v4 = vpack.c.bf16 %v746_v48, %v745_v47  ;;  %v750_v60 = vadd.f32 %v3333_v11, %v3227_v6  ;;  %v3365_v6 = vld [vmem:[%s3070_s11 + $0x118] sm:$0xff]  ;;  %v2336_v47 = vpack.c.bf16 %v3386_v42, %v3379_v41  ;;  %v2357_v48 = vpack.c.bf16 %v3392_v45, %v3389_v44 }
  0x98   : > { %2326 = vmatprep.subr.bf16.mxu1 %v3857_v1  ;;  %v3339_v12 = vpack.c.bf16 %v748_v54, %v747_v53  ;;  %v2333_v38 = vpack.c.bf16 %v3365_v6, %v3361_v24  ;;  %v3408_v53 = vld [vmem:[%s3070_s11 + $0x1a0] sm:$0xff]  ;;  %v3411_v54 = vld [vmem:[%s3070_s11 + $0x1a8] sm:$0xff] }
  0x99   : > { %2304 = vmatpush3.bf16.msra.mxu0 %v2303_v7  ;;  %v3329_v7 = vpack.c.bf16 %v732_v51, %v731_v50  ;;  %v3400_v50 = vld [vmem:[%s3070_s11 + $0x130] sm:$0xff]  ;;  %v3405_v51 = vld [vmem:[%s3070_s11 + $0x138] sm:$0xff] }
  0x9a   : > { %2329 = vmatprep.subr.bf16.mxu0 %v3857_v1 }
  0x9b   : > { %2328 = vmatpush3.bf16.msra.mxu1 %v2327_v10  ;;  %v3331_v10 = vld [vmem:[#allocation8 + $0x70] sm:$0xff] }
  0x9c   : > { %2353 = vmatprep.subr.bf16.mxu1 %v3857_v1  ;;  %3876 = vst [vmem:[#allocation18_spill] sm:$0xff] %v3331_v10  ;;  %v733_v56 = vadd.f32 %v3331_v10, %v3215_v62  ;;  %v749_v59 = vadd.f32 %v3331_v10, %v3224_v5  ;;  %v3350_v62 = vand.u32 127, %v361_v0  ;;  %v2330_v5 = vpack.c.bf16 %v3356_v63, %v3353_v19  ;;  %v3368_v0 = vld [vmem:[%s3070_s11 + $0x180] sm:$0xff]  ;;  %v3474_v10 = vld [vmem:[%s3070_s11 + $0x170] sm:$0xff] }
  0x9d   : > { %v2354_v39 = vpack.c.bf16 %v3371_v29, %v3368_v0 }
  0x9e   : > { %v3345_v16 = vpack.c.bf16 %v734_v57, %v733_v56  ;;  %v3347_v17 = vpack.c.bf16 %v750_v60, %v749_v59  ;;  %v2339_v56 = vpack.c.bf16 %v3405_v51, %v3400_v50  ;;  %v2360_v57 = vpack.c.bf16 %v3411_v54, %v3408_v53  ;;  %v3420_v59 = vld [vmem:[%s3070_s11 + $0x140] sm:$0xff]  ;;  %v3425_v60 = vld [vmem:[%s3070_s11 + $0x148] sm:$0xff] }
  0xf2   : > { %v369_v21 = vpop.permute.xlu0 %368 }
  0xf3   : > { %v1640_v23 = vadd.s32 4294967295, %v369_v21  ;;  %vm399_vm2 = vcmp.gt.s32.totalorder %v369_v21, 0  ;;  %v3428_v21 = vld [vmem:[%s3070_s11 + $0x1b0] sm:$0xff] }
  0xf5   : > { %vm395_vm1 = vcmp.eq.s32.totalorder %v3350_v62, %v1640_v23  ;;  %v3431_v23 = vld [vmem:[%s3070_s11 + $0x1b8] sm:$0xff] }
  0xf6   : > { %vm411_vm3 = vmand %vm395_vm1, %vm399_vm2  ;;  %v376_v30 = vpop.permute.xlu0 %375 }
  0xf7   : > { %v1641_v32 = vadd.s32 4294967295, %v376_v30  ;;  %1894 = vmatmul.mubr.msk.f32.vlgmr.msra.gmra.mrb[0].mxu0 %vm411_vm3, %v3839_v34  ;;  %vm400_vm5 = vcmp.gt.s32.totalorder %v376_v30, 0  ;;  %v2363_v30 = vpack.c.bf16 %v3431_v23, %v3428_v21 }
  0xf8   : > { %2331 = vmatpush3.bf16.msra.mxu0 %v2330_v5  ;;  %1963 = vmatprep.mubr.msk.f32.mxu0 %vm2839_vm0, %v3837_v3  ;;  %v2342_v5 = vpack.c.bf16 %v3425_v60, %v3420_v59 }
  0xf9   : > { %vm396_vm4 = vcmp.eq.s32.totalorder %v3350_v62, %v1641_v32  ;;  %2332 = vmatprep.subr.bf16.mxu0 %v3857_v1  ;;  %v3438_v32 = vld [vmem:[%s3070_s11 + $0x150] sm:$0xff] }
  0xfa   : > { %vm412_vm6 = vmand %vm396_vm4, %vm400_vm5  ;;  %vm1493_vm5 = vcmask 1041409  }
  0xfb   : > { %1929 = vmatmul.mubr.msk.f32.vlgmr.msra.gmra.mrb[0].mxu1 %vm412_vm6, %v3839_v34  ;;  %v3461_v34 = vld [vmem:[%s3070_s11 + $0x168] sm:$0xff]  ;;  %vm1495_vm6 = vcmask 1042434  }
  0xfc   : > { %2334 = vmatpush3.bf16.msra.mxu0 %v2333_v38  ;;  %2355 = vmatpush3.bf16.msra.mxu1 %v2354_v39  ;;  %v3443_v38 = vld [vmem:[%s3070_s11 + $0x158] sm:$0xff]  ;;  %v3446_v39 = vld [vmem:[%s3070_s11 + $0x1c0] sm:$0xff]  ;;  %3880 = vst [vmem:[#allocation22_spill] sm:$0xff] %v3461_v34 }
  0xfd   : > { %2335 = vmatprep.subr.bf16.mxu0 %v3857_v1  ;;  %2356 = vmatprep.subr.bf16.mxu1 %v3857_v1  ;;  %3878 = vst [vmem:[#allocation20_spill] sm:$0xff] %v3443_v38 }
  0xfe   : > { %1998 = vmatprep.mubr.msk.f32.mxu1 %vm2839_vm0, %v3837_v3  ;;  %v383_v3 = vpop.permute.xlu1 %382 }
  0xff   : > { %v1642_v61 = vadd.s32 4294967295, %v383_v3  ;;  %vm401_vm8 = vcmp.gt.s32.totalorder %v383_v3, 0  ;;  %v3883_v3 = vmov 1.0  }
 0x100   : > { %2337 = vmatpush3.bf16.msra.mxu0 %v2336_v47  ;;  %2358 = vmatpush3.bf16.msra.mxu1 %v2357_v48  ;;  %v3449_v47 = vld [vmem:[%s3070_s11 + $0x1c8] sm:$0xff]  ;;  %v2345_v48 = vpack.c.bf16 %v3443_v38, %v3438_v32  ;;  %v3498_v38 = vld [vmem:[%s3070_s11 + $0x1f8] sm:$0xff] }
 0x101   : > { %2338 = vmatprep.subr.bf16.mxu0 %v3857_v1  ;;  %2359 = vmatprep.subr.bf16.mxu1 %v3857_v1  ;;  %vm397_vm7 = vcmp.eq.s32.totalorder %v3350_v62, %v1642_v61  ;;  %v3884_v61 = vmov 0.0  }
 0x102   : > { %vm413_vm9 = vmand %vm397_vm7, %vm401_vm8  ;;  %vm1497_vm7 = vcmask 1043459   ;;  %vm1500_vm8 = vcmask 60416  }
 0x104   : > { %2340 = vmatpush3.bf16.msra.mxu0 %v2339_v56  ;;  %2361 = vmatpush3.bf16.msra.mxu1 %v2360_v57  ;;  %v2366_v56 = vpack.c.bf16 %v3449_v47, %v3446_v39  ;;  %v3456_v57 = vld [vmem:[%s3070_s11 + $0x160] sm:$0xff] }
 0x105   : > { %2341 = vmatprep.subr.bf16.mxu0 %v3857_v1  ;;  %2362 = vmatprep.subr.bf16.mxu1 %v3857_v1  ;;  %3879 = vst [vmem:[#allocation21_spill] sm:$0xff] %v3456_v57  ;;  %v2348_v2 = vpack.c.bf16 %v3461_v34, %v3456_v57  ;;  %v2351_v34 = vpack.c.bf16 %v3479_v58, %v3474_v10 }
 0x108   : > { %2343 = vmatpush3.bf16.msra.mxu0 %v2342_v5  ;;  %2364 = vmatpush3.bf16.msra.mxu1 %v2363_v30  ;;  %v3464_v5 = vld [vmem:[%s3070_s11 + $0x1d0] sm:$0xff]  ;;  %v3467_v30 = vld [vmem:[%s3070_s11 + $0x1d8] sm:$0xff] }
 0x109   : > { %2344 = vmatprep.subr.bf16.mxu0 %v3857_v1  ;;  %2365 = vmatprep.subr.bf16.mxu1 %v3857_v1  ;;  %3881 = vst [vmem:[#allocation23_spill] sm:$0xff] %v3464_v5  ;;  %3882 = vst [vmem:[#allocation24_spill] sm:$0xff] %v3467_v30  ;;  %v2369_v11 = vpack.c.bf16 %v3467_v30, %v3464_v5  ;;  %v3495_v5 = vld [vmem:[%s3070_s11 + $0x1f0] sm:$0xff] }
 0x10c   : > { %2346 = vmatpush3.bf16.msra.mxu0 %v2345_v48  ;;  %2367 = vmatpush3.bf16.msra.mxu1 %v2366_v56  ;;  %v3485_v48 = vld [vmem:[%s3070_s11 + $0x1e8] sm:$0xff]  ;;  %v390_v56 = vpop.permute.xlu1 %389 }
 0x10d   : > { %2347 = vmatprep.subr.bf16.mxu0 %v3857_v1  ;;  %2368 = vmatprep.subr.bf16.mxu1 %v3857_v1  ;;  %v2372_v57 = vpack.c.bf16 %v3485_v48, %v3482_v49  ;;  %v1643_v30 = vadd.s32 4294967295, %v390_v56  ;;  %vm402_vm11 = vcmp.gt.s32.totalorder %v390_v56, 0  ;;  %v768_v56 = vadd.f32 %v3097_v14, %v3371_v29 }
 0x10f   : > { %vm398_vm10 = vcmp.eq.s32.totalorder %v3350_v62, %v1643_v30  ;;  %v767_v30 = vadd.f32 %v3095_v13, %v3368_v0 }
 0x110   : > { %2349 = vmatpush3.bf16.msra.mxu0 %v2348_v2  ;;  %2370 = vmatpush3.bf16.msra.mxu1 %v2369_v11  ;;  %v2375_v2 = vpack.c.bf16 %v3498_v38, %v3495_v5  ;;  %vm414_vm12 = vmand %vm398_vm10, %vm402_vm11  ;;  %v751_v11 = vadd.f32 %v3095_v13, %v3353_v19  ;;  %v753_v19 = vadd.f32 %v3231_v8, %v3361_v24  ;;  %v3885_v13 = vmov 0.0|0.0  }
 0x111   : > { %2350 = vmatprep.subr.bf16.mxu0 %v3857_v1  ;;  %2371 = vmatprep.subr.bf16.mxu1 %v3857_v1  ;;  %v769_v24 = vadd.f32 %v3231_v8, %v3389_v44  ;;  %v772_v44 = vadd.f32 %v3253_v15, %v3411_v54  ;;  %v760_v54 = vadd.f32 %v3285_v37, %v3425_v60 }
 0x114   : > { %2352 = vmatpush3.bf16.msra.mxu0 %v2351_v34  ;;  %2373 = vmatpush3.bf16.msra.mxu1 %v2372_v57  ;;  %v752_v34 = vadd.f32 %v3097_v14, %v3356_v63  ;;  %v754_v63 = vadd.f32 %v3233_v9, %v3365_v6  ;;  %v770_v6 = vadd.f32 %v3233_v9, %v3392_v45 }
 0x115   : > { %2374 = vmatprep.subr.bf16.mxu1 %v3857_v1  ;;  %2377 = vmatprep.subr.bf16.mxu0 %v3857_v1  ;;  %v771_v9 = vadd.f32 %v3251_v20, %v3408_v53  ;;  %v758_v45 = vadd.f32 %v3269_v28, %v3405_v51  ;;  %v774_v53 = vadd.f32 %v3269_v28, %v3431_v23 }
 0x116   : > { %v3548_v57 = vpack.c.bf16 %v752_v34, %v751_v11  ;;  %v3571_v29 = vpack.c.bf16 %v754_v63, %v753_v19  ;;  %v3581_v11 = vpack.c.bf16 %v770_v6, %v769_v24  ;;  %v755_v34 = vadd.f32 %v3251_v20, %v3379_v41  ;;  %v3887_v19 = vld [vmem:[#allocation15_spill] sm:$0xff]  ;;  %v3889_v24 = vld [vmem:[#allocation24_spill] sm:$0xff] }
 0x117   : > { %1964 = vmatmul.mubr.msk.f32.vlgmr.msra.gmra.mrb[2].mxu0 %vm413_vm9, %v3883_v3  ;;  %v3597_v41 = vpack.c.bf16 %v772_v44, %v771_v9  ;;  %v759_v51 = vadd.f32 %v3283_v36, %v3420_v59  ;;  %v775_v28 = vadd.f32 %v3283_v36, %v3446_v39  ;;  %v778_v6 = vadd.f32 %v3887_v19, %v3889_v24  ;;  %v3892_v44 = vld [vmem:[#allocation22_spill] sm:$0xff] }
 0x118   : > { %2376 = vmatpush3.bf16.msra.mxu1 %v2375_v2  ;;  %2033 = vmatprep.mubr.msk.f32.mxu0 %vm2839_vm0, %v3884_v61  ;;  %vm1513_vm9 = vcmask 24576  }
 0x119   : > { %2401 = vmatprep.subr.bf16.mxu1 %v3857_v1 }
 0x11b   : > { %1999 = vmatmul.mubr.msk.f32.vlgmr.msra.gmra.mrb[2].mxu1 %vm414_vm12, %v3883_v3 }
 0x11c   : > { %2068 = vmatprep.mubr.msk.f32.mxu1 %vm2839_vm0, %v3884_v61 }
 0x11d   : > { %2379 = vmatpush3.bf16.xpose.msra.mxu0 %v3111_v25 }
 0x11e   : > { %2380 = vmatprep.subr.bf16.mxu0 %v3857_v1 }
 0x121   : > { %2403 = vmatpush3.bf16.xpose.msra.mxu1 %v3128_v33 }
 0x122   : > { %2404 = vmatprep.subr.bf16.mxu1 %v3857_v1 }
 0x125   : > { %2382 = vmatpush3.bf16.xpose.msra.mxu0 %v3249_v18 }
 0x126   : > { %2383 = vmatprep.subr.bf16.mxu0 %v3857_v1 }
 0x129   : > { %2406 = vmatpush3.bf16.xpose.msra.mxu1 %v3259_v22 }
 0x12a   : > { %2407 = vmatprep.subr.bf16.mxu1 %v3857_v1 }
 0x12d   : > { %2385 = vmatpush3.bf16.xpose.msra.mxu0 %v3265_v26 }
 0x12e   : > { %2386 = vmatprep.subr.bf16.mxu0 %v3857_v1 }
 0x131   : > { %2409 = vmatpush3.bf16.xpose.msra.mxu1 %v3275_v31 }
 0x132   : > { %2410 = vmatprep.subr.bf16.mxu1 %v3857_v1 }
 0x135   : > { %2388 = vmatpush3.bf16.xpose.msra.mxu0 %v3281_v35 }
 0x136   : > { %2389 = vmatprep.subr.bf16.mxu0 %v3857_v1 }
 0x139   : > { %2412 = vmatpush3.bf16.xpose.msra.mxu1 %v3291_v40 }
 0x13a   : > { %2413 = vmatprep.subr.bf16.mxu1 %v3857_v1 }
 0x13d   : > { %2391 = vmatpush3.bf16.xpose.msra.mxu0 %v3297_v43 }
 0x13e   : > { %2392 = vmatprep.subr.bf16.mxu0 %v3857_v1 }
 0x141   : > { %2415 = vmatpush3.bf16.xpose.msra.mxu1 %v3307_v52 }
 0x142   : > { %2416 = vmatprep.subr.bf16.mxu1 %v3857_v1 }
 0x145   : > { %2394 = vmatpush3.bf16.xpose.msra.mxu0 %v3313_v55 }
 0x146   : > { %2395 = vmatprep.subr.bf16.mxu0 %v3857_v1 }
 0x149   : > { %2418 = vmatpush3.bf16.xpose.msra.mxu1 %v3323_v4 }
 0x14a   : > { %2419 = vmatprep.subr.bf16.mxu1 %v3857_v1 }
 0x14d   : > { %2397 = vmatpush3.bf16.xpose.msra.mxu0 %v3329_v7 }
 0x14e   : > { %2398 = vmatprep.subr.bf16.mxu0 %v3857_v1 }
 0x151   : > { %2421 = vmatpush3.bf16.xpose.msra.mxu1 %v3339_v12 }
 0x152   : > { %2422 = vmatprep.subr.bf16.mxu1 %v3857_v1 }
 0x155   : > { %2400 = vmatpush3.bf16.xpose.msra.mxu0 %v3345_v16 }
 0x156   : > { %2425 = vmatprep.subr.bf16.mxu0 %v3857_v1 }
 0x159   : > { %2424 = vmatpush3.bf16.xpose.msra.mxu1 %v3347_v17 }
 0x15a   : > { %2449 = vmatprep.subr.bf16.mxu1 %v3857_v1  ;;  %v3558_v1 = vpack.c.bf16 %v768_v56, %v767_v30  ;;  %v756_v30 = vadd.f32 %v3253_v15, %v3386_v42  ;;  %v757_v42 = vadd.f32 %v3267_v27, %v3400_v50  ;;  %v773_v15 = vadd.f32 %v3267_v27, %v3428_v21 }
 0x15b   : > { %v3621_v27 = vpack.c.bf16 %v760_v54, %v759_v51  ;;  %v776_v21 = vadd.f32 %v3285_v37, %v3449_v47  ;;  %v761_v56 = vadd.f32 %v3299_v46, %v3438_v32  ;;  %v3888_v47 = vld [vmem:[#allocation23_spill] sm:$0xff]  ;;  %v3894_v54 = vld [vmem:[#allocation18_spill] sm:$0xff] }
 0x15c   : > { %v3589_v8 = vpack.c.bf16 %v756_v30, %v755_v34  ;;  %v3605_v20 = vpack.c.bf16 %v758_v45, %v757_v42  ;;  %v3613_v50 = vpack.c.bf16 %v774_v53, %v773_v15  ;;  %v3890_v34 = vld [vmem:[#allocation21_spill] sm:$0xff]  ;;  %v3891_v30 = vld [vmem:[#allocation16_spill] sm:$0xff] }
 0x15d   : > { %v3631_v60 = vpack.c.bf16 %v776_v21, %v775_v28  ;;  %v763_v9 = vadd.f32 %v3891_v30, %v3890_v34  ;;  %v3893_v42 = vld [vmem:[#allocation17_spill] sm:$0xff]  ;;  %v779_v15 = vadd.f32 %v3891_v30, %v3482_v49  ;;  %v765_v28 = vadd.f32 %v3894_v54, %v3474_v10  ;;  %v3895_v21 = vld [vmem:[#allocation19_spill] sm:$0xff] }
 0x15e   : > { %v764_v45 = vadd.f32 %v3893_v42, %v3892_v44  ;;  %v780_v53 = vadd.f32 %v3893_v42, %v3485_v48  ;;  %v781_v48 = vadd.f32 %v3894_v54, %v3495_v5 }
 0x160   : > { %v3665_v51 = vpack.c.bf16 %v780_v53, %v779_v15 }
 0x1ca   : > { %v3554_v2 = vpop.f32.mrb[0].mxu0 }
 0x1cb   : > { %v1895_v3 = vpop.f32.mrb[1].mxu0  ;;  %2034 = vmatmul.mubr.f32.vlgmr.msra.gmra.mrb[4].mxu0 %v3554_v2 }
 0x1cc   : > { %2427 = vmatpush3.bf16.xpose.msra.mxu0 %v3548_v57  ;;  %2103 = vmatprep.mubr.msk.f32.mxu0 %vm2839_vm0, %v3884_v61  ;;  %v3886_v3 = vld [vmem:[#allocation20_spill] sm:$0xff] }
 0x1cd   : > { %2428 = vmatprep.subr.bf16.mxu0 %v3885_v13  ;;  %v762_v63 = vadd.f32 %v3887_v19, %v3886_v3 }
 0x1ce   : > { %v3567_v14 = vpop.f32.mrb[0].mxu1 }
 0x1cf   : > { %v1930_v0 = vpop.f32.mrb[1].mxu1  ;;  %2069 = vmatmul.mubr.f32.vlgmr.msra.gmra.mrb[4].mxu1 %v3567_v14  ;;  %v3641_v39 = vpack.c.bf16 %v762_v63, %v761_v56  ;;  %v782_v56 = vadd.f32 %v3895_v21, %v3498_v38 }
 0x1d0   : > { %2451 = vmatpush3.bf16.xpose.msra.mxu1 %v3558_v1  ;;  %2138 = vmatprep.mubr.msk.f32.mxu1 %vm2839_vm0, %v3884_v61  ;;  %v777_v0 = vadd.f32 %v3299_v46, %v3888_v47  ;;  %v3657_v46 = vpack.c.bf16 %v764_v45, %v763_v9 }
 0x1d1   : > { %2452 = vmatprep.subr.bf16.mxu1 %v3885_v13  ;;  %v3681_v10 = vpack.c.bf16 %v782_v56, %v781_v48 }
 0x1d2   : > { %v3649_v32 = vpack.c.bf16 %v778_v6, %v777_v0 }
 0x1d4   : > { %2430 = vmatpush3.bf16.xpose.msra.mxu0 %v3571_v29 }
 0x1d5   : > { %2431 = vmatprep.subr.bf16.mxu0 %v3885_v13 }
 0x1d8   : > { %2454 = vmatpush3.bf16.xpose.msra.mxu1 %v3581_v11 }
 0x1d9   : > { %2455 = vmatprep.subr.bf16.mxu1 %v3885_v13 }
 0x1dc   : > { %2433 = vmatpush3.bf16.xpose.msra.mxu0 %v3589_v8 }
 0x1dd   : > { %2434 = vmatprep.subr.bf16.mxu0 %v3885_v13 }
 0x1e0   : > { %2457 = vmatpush3.bf16.xpose.msra.mxu1 %v3597_v41 }
 0x1e1   : > { %2458 = vmatprep.subr.bf16.mxu1 %v3885_v13 }
 0x1e4   : > { %2436 = vmatpush3.bf16.xpose.msra.mxu0 %v3605_v20 }
 0x1e5   : > { %2437 = vmatprep.subr.bf16.mxu0 %v3885_v13 }
 0x1e8   : > { %2460 = vmatpush3.bf16.xpose.msra.mxu1 %v3613_v50 }
 0x1e9   : > { %2461 = vmatprep.subr.bf16.mxu1 %v3885_v13 }
 0x1ea   : > { %v3628_v23 = vpop.f32.mrb[2].mxu0 }
 0x1eb   : > { %v1965_v59 = vpop.f32.mrb[3].mxu0 }
 0x1ec   : > { %2439 = vmatpush3.bf16.xpose.msra.mxu0 %v3621_v27  ;;  %v766_v59 = vadd.f32 %v3895_v21, %v3479_v58 }
 0x1ed   : > { %2440 = vmatprep.subr.bf16.mxu0 %v3885_v13 }
 0x1ee   : > { %v3638_v36 = vpop.f32.mrb[2].mxu1  ;;  %v3673_v49 = vpack.c.bf16 %v766_v59, %v765_v28 }
 0x1ef   : > { %v2000_v37 = vpop.f32.mrb[3].mxu1 }
 0x1f0   : > { %2463 = vmatpush3.bf16.xpose.msra.mxu1 %v3631_v60 }
 0x1f1   : > { %2464 = vmatprep.subr.bf16.mxu1 %v3885_v13 }
 0x1f4   : > { %2442 = vmatpush3.bf16.xpose.msra.mxu0 %v3641_v39 }
 0x1f5   : > { %2443 = vmatprep.subr.bf16.mxu0 %v3885_v13 }
 0x1f8   : > { %2466 = vmatpush3.bf16.xpose.msra.mxu1 %v3649_v32 }
 0x1f9   : > { %2467 = vmatprep.subr.bf16.mxu1 %v3885_v13 }
 0x1fc   : > { %2445 = vmatpush3.bf16.xpose.msra.mxu0 %v3657_v46 }
 0x1fd   : > { %2446 = vmatprep.subr.bf16.mxu0 %v3885_v13 }
 0x200   : > { %2469 = vmatpush3.bf16.xpose.msra.mxu1 %v3665_v51 }
 0x201   : > { %2470 = vmatprep.subr.bf16.mxu1 %v3885_v13 }
 0x204   : > { %2448 = vmatpush3.bf16.xpose.msra.mxu0 %v3673_v49 }
 0x205   : > { %2473 = vmatprep.subr.bf16.mxu0 %v3885_v13 }
 0x208   : > { %2472 = vmatpush3.bf16.xpose.msra.mxu1 %v3681_v10 }
 0x209   : > { %2497 = vmatprep.subr.bf16.mxu1 %v3885_v13 }
 0x20b   : > { %2104 = vmatmul.mubr.f32.vlgmr.msra.gmra.mrb[6].mxu0 %v3628_v23 }
 0x20c   : > { %2475 = vmatpush3.bf16.msra.mxu0 %v3111_v25  ;;  %2173 = vmatprep.mubr.msk.f32.mxu0 %vm2839_vm0, %v3884_v61 }
 0x20d   : > { %2476 = vmatprep.subr.bf16.mxu0 %v3885_v13 }
 0x20f   : > { %2139 = vmatmul.mubr.f32.vlgmr.msra.gmra.mrb[6].mxu1 %v3638_v36 }
 0x210   : > { %2478 = vmatpush3.bf16.msra.mxu0 %v3249_v18  ;;  %2499 = vmatpush3.bf16.msra.mxu1 %v3128_v33 }
 0x211   : > { %2479 = vmatprep.subr.bf16.mxu0 %v3885_v13  ;;  %2500 = vmatprep.subr.bf16.mxu1 %v3885_v13 }
 0x212   : > { %2208 = vmatprep.mubr.msk.f32.mxu1 %vm2839_vm0, %v3884_v61 }
 0x214   : > { %2481 = vmatpush3.bf16.msra.mxu0 %v3265_v26  ;;  %2502 = vmatpush3.bf16.msra.mxu1 %v3259_v22 }
 0x215   : > { %2482 = vmatprep.subr.bf16.mxu0 %v3885_v13  ;;  %2503 = vmatprep.subr.bf16.mxu1 %v3885_v13 }
 0x218   : > { %2484 = vmatpush3.bf16.msra.mxu0 %v3281_v35  ;;  %2505 = vmatpush3.bf16.msra.mxu1 %v3275_v31 }
 0x219   : > { %2485 = vmatprep.subr.bf16.mxu0 %v3885_v13  ;;  %2506 = vmatprep.subr.bf16.mxu1 %v3885_v13 }
 0x21c   : > { %2487 = vmatpush3.bf16.msra.mxu0 %v3297_v43  ;;  %2508 = vmatpush3.bf16.msra.mxu1 %v3291_v40 }
 0x21d   : > { %2488 = vmatprep.subr.bf16.mxu0 %v3885_v13  ;;  %2509 = vmatprep.subr.bf16.mxu1 %v3885_v13 }
 0x220   : > { %2490 = vmatpush3.bf16.msra.mxu0 %v3313_v55  ;;  %2511 = vmatpush3.bf16.msra.mxu1 %v3307_v52 }
 0x221   : > { %2491 = vmatprep.subr.bf16.mxu0 %v3885_v13  ;;  %2512 = vmatprep.subr.bf16.mxu1 %v3885_v13 }
 0x224   : > { %2493 = vmatpush3.bf16.msra.mxu0 %v3329_v7  ;;  %2514 = vmatpush3.bf16.msra.mxu1 %v3323_v4 }
 0x225   : > { %2494 = vmatprep.subr.bf16.mxu0 %v3885_v13  ;;  %2515 = vmatprep.subr.bf16.mxu1 %v3885_v13 }
 0x228   : > { %2496 = vmatpush3.bf16.msra.mxu0 %v3345_v16  ;;  %2517 = vmatpush3.bf16.msra.mxu1 %v3339_v12 }
 0x229   : > { %2518 = vmatprep.subr.bf16.mxu1 %v3885_v13  ;;  %2521 = vmatprep.subr.bf16.mxu0 %v3885_v13 }
 0x22c   : > { %2520 = vmatpush3.bf16.msra.mxu1 %v3347_v17 }
 0x22d   : > { %2545 = vmatprep.subr.bf16.mxu1 %v3885_v13 }
 0x29e   : > { %v849_v25 = vpop.f32.mrb[4].mxu0 }
 0x29f   : > { %v1063_v33 = vmul.f32 0.088388346, %v849_v25  ;;  %v2035_v18 = vpop.f32.mrb[5].mxu0 }
 0x2a1   : > { %1067 = vmax.xlane.f32.xlu0 %v1063_v33 }
 0x2a2   : > { %v919_v22 = vpop.f32.mrb[4].mxu1 }
 0x2a3   : > { %v1064_v26 = vmul.f32 0.088388346, %v919_v22  ;;  %v2070_v31 = vpop.f32.mrb[5].mxu1 }
 0x2a5   : > { %1069 = vmax.xlane.f32.xlu1 %v1064_v26 }
 0x2de   : > { %v989_v35 = vpop.f32.mrb[6].mxu0 }
 0x2df   : > { %v1065_v40 = vmul.f32 0.088388346, %v989_v35  ;;  %v2105_v43 = vpop.f32.mrb[7].mxu0 }
 0x2e1   : > { %1071 = vmax.xlane.f32.xlu0 %v1065_v40 }
 0x2e2   : > { %v1059_v52 = vpop.f32.mrb[6].mxu1 }
 0x2e3   : > { %v1066_v55 = vmul.f32 0.088388346, %v1059_v52  ;;  %v2140_v58 = vpop.f32.mrb[7].mxu1 }
 0x2e5   : > { %1073 = vmax.xlane.f32.xlu0 %v1066_v55 }
 0x32e   : > { %v1068_v4 = vpop.xlane.xlu0 %1067 }
 0x32f   : > { %v1075_v7 = vsub.f32 %v1063_v33, %v1068_v4 }
 0x331   : > { %v1079_v12 = vmul.f32 1.442695, %v1075_v7 }
 0x332   : > { %v1070_v16 = vpop.xlane.xlu1 %1069 }
 0x333   : > { %2637 = vpow2.f32 %v1079_v12  ;;  %v1076_v17 = vsub.f32 %v1064_v26, %v1070_v16 }
 0x335   : > { %v1081_v38 = vmul.f32 1.442695, %v1076_v17 }
 0x337   : > { %2639 = vpow2.f32 %v1081_v38 }
 0x33d   : > { %v2638_v5 = vpop.eup %2637 }
 0x33e   : > { %1087 = vadd.xlane.f32.xlu1 %v2638_v5 }
 0x341   : > { %v2640_v3 = vpop.eup %2639 }
 0x342   : > { %1089 = vadd.xlane.f32.xlu0 %v2640_v3 }
 0x36e   : > { %v1072_v19 = vpop.xlane.xlu0 %1071 }
 0x36f   : > { %v1077_v63 = vsub.f32 %v1065_v40, %v1072_v19 }
 0x371   : > { %v1083_v37 = vmul.f32 1.442695, %v1077_v63 }
 0x372   : > { %v1074_v47 = vpop.xlane.xlu0 %1073 }
 0x373   : > { %2641 = vpow2.f32 %v1083_v37  ;;  %v1078_v0 = vsub.f32 %v1066_v55, %v1074_v47  ;;  %v1460_v37 = vld [vmem:[%s3829_s3] sm:$0xff] }
 0x375   : > { %v1085_v24 = vmul.f32 1.442695, %v1078_v0 }
 0x377   : > { %2643 = vpow2.f32 %v1085_v24 }
 0x37d   : > { %v2642_v6 = vpop.eup %2641 }
 0x37e   : > { %1091 = vadd.xlane.f32.xlu1 %v2642_v6 }
 0x381   : > { %v2644_v34 = vpop.eup %2643 }
 0x382   : > { %1093 = vadd.xlane.f32.xlu0 %v2644_v34 }
 0x3cb   : > { %v1088_v30 = vpop.xlane.xlu1 %1087 }
 0x3cc   : > { %2645 = vrcp.f32 %v1088_v30 }
 0x3cf   : > { %v1090_v9 = vpop.xlane.xlu0 %1089 }
 0x3d0   : > { %2647 = vrcp.f32 %v1090_v9 }
 0x3d6   : > { %v2646_v44 = vpop.eup %2645 }
 0x3d7   : > { %v1096_v42 = vmul.f32 %v2646_v44, %v2638_v5 }
 0x3d9   : > { %2174 = vmatmul.mubr.f32.vlgmr.msra.gmra.mrb[8].mxu0 %v1096_v42 }
 0x3da   : > { %v2648_v45 = vpop.eup %2647  ;;  %2523 = vmatpush3.bf16.msra.mxu0 %v3548_v57  ;;  %2243 = vmatprep.mubr.msk.f32.mxu0 %vm2839_vm0, %v3884_v61 }
 0x3db   : > { %v1098_v15 = vmul.f32 %v2648_v45, %v2640_v3  ;;  %2524 = vmatprep.subr.bf16.mxu0 %v3885_v13 }
 0x3dd   : > { %2209 = vmatmul.mubr.f32.vlgmr.msra.gmra.mrb[8].mxu1 %v1098_v15 }
 0x3de   : > { %2526 = vmatpush3.bf16.msra.mxu0 %v3571_v29  ;;  %2547 = vmatpush3.bf16.msra.mxu1 %v3558_v1 }
 0x3df   : > { %2527 = vmatprep.subr.bf16.mxu0 %v3885_v13  ;;  %2548 = vmatprep.subr.bf16.mxu1 %v3885_v13 }
 0x3e0   : > { %2278 = vmatprep.mubr.msk.f32.mxu1 %vm2839_vm0, %v3884_v61 }
 0x3e2   : > { %2529 = vmatpush3.bf16.msra.mxu0 %v3589_v8  ;;  %2550 = vmatpush3.bf16.msra.mxu1 %v3581_v11 }
 0x3e3   : > { %2530 = vmatprep.subr.bf16.mxu0 %v3885_v13  ;;  %2551 = vmatprep.subr.bf16.mxu1 %v3885_v13 }
 0x3e6   : > { %2532 = vmatpush3.bf16.msra.mxu0 %v3605_v20  ;;  %2553 = vmatpush3.bf16.msra.mxu1 %v3597_v41 }
 0x3e7   : > { %2533 = vmatprep.subr.bf16.mxu0 %v3885_v13  ;;  %2554 = vmatprep.subr.bf16.mxu1 %v3885_v13 }
 0x3ea   : > { %2535 = vmatpush3.bf16.msra.mxu0 %v3621_v27  ;;  %2556 = vmatpush3.bf16.msra.mxu1 %v3613_v50 }
 0x3eb   : > { %2536 = vmatprep.subr.bf16.mxu0 %v3885_v13  ;;  %2557 = vmatprep.subr.bf16.mxu1 %v3885_v13 }
 0x3ee   : > { %2538 = vmatpush3.bf16.msra.mxu0 %v3641_v39  ;;  %2559 = vmatpush3.bf16.msra.mxu1 %v3631_v60 }
 0x3ef   : > { %2539 = vmatprep.subr.bf16.mxu0 %v3885_v13  ;;  %2560 = vmatprep.subr.bf16.mxu1 %v3885_v13 }
 0x3f2   : > { %2541 = vmatpush3.bf16.msra.mxu0 %v3657_v46  ;;  %2562 = vmatpush3.bf16.msra.mxu1 %v3649_v32 }
 0x3f3   : > { %2542 = vmatprep.subr.bf16.mxu0 %v3885_v13  ;;  %2563 = vmatprep.subr.bf16.mxu1 %v3885_v13 }
 0x3f6   : > { %2544 = vmatpush3.bf16.msra.mxu0 %v3673_v49  ;;  %2565 = vmatpush3.bf16.msra.mxu1 %v3665_v51 }
 0x3f7   : > { %2566 = vmatprep.subr.bf16.mxu1 %v3885_v13 }
 0x3fa   : > { %2568 = vmatpush3.bf16.msra.mxu1 %v3681_v10 }
 0x40b   : > { %v1092_v1 = vpop.xlane.xlu1 %1091 }
 0x40c   : > { %2649 = vrcp.f32 %v1092_v1 }
 0x40f   : > { %v1094_v61 = vpop.xlane.xlu0 %1093 }
 0x410   : > { %2651 = vrcp.f32 %v1094_v61 }
 0x416   : > { %v2650_v57 = vpop.eup %2649 }
 0x417   : > { %v1100_v29 = vmul.f32 %v2650_v57, %v2642_v6 }
 0x419   : > { %2244 = vmatmul.mubr.f32.vlgmr.msra.gmra.mrb[10].mxu0 %v1100_v29 }
 0x41a   : > { %v2652_v11 = vpop.eup %2651 }
 0x41b   : > { %v1102_v8 = vmul.f32 %v2652_v11, %v2644_v34 }
 0x41d   : > { %2279 = vmatmul.mubr.f32.vlgmr.msra.gmra.mrb[10].mxu1 %v1102_v8 }
 0x4ac   : > { %v1169_v41 = vpop.f32.mrb[8].mxu0 }
 0x4ad   : > { %v1383_v20 = vadd.f32 %v1169_v41, %v3554_v2  ;;  %v2175_v50 = vpop.f32.mrb[9].mxu0 }
 0x4af   : > { %1387 = vadd.xlane.f32.xlu1 %v1383_v20 }
 0x4b0   : > { %v1239_v27 = vpop.f32.mrb[8].mxu1 }
 0x4b1   : > { %v1384_v13 = vadd.f32 %v1239_v27, %v3567_v14  ;;  %v2210_v60 = vpop.f32.mrb[9].mxu1 }
 0x4b3   : > { %1389 = vadd.xlane.f32.xlu0 %v1384_v13 }
 0x4ec   : > { %v1309_v39 = vpop.f32.mrb[10].mxu0 }
 0x4ed   : > { %v1385_v32 = vadd.f32 %v1309_v39, %v3628_v23  ;;  %v2245_v46 = vpop.f32.mrb[11].mxu0 }
 0x4ef   : > { %1391 = vadd.xlane.f32.xlu1 %v1385_v32 }
 0x4f0   : > { %v1379_v53 = vpop.f32.mrb[10].mxu1 }
 0x4f1   : > { %v1386_v51 = vadd.f32 %v1379_v53, %v3638_v36  ;;  %v2280_v54 = vpop.f32.mrb[11].mxu1 }
 0x4f3   : > { %1393 = vadd.xlane.f32.xlu0 %v1386_v51 }
 0x53c   : > { %v1388_v28 = vpop.xlane.xlu1 %1387 }
 0x53d   : > { %v1396_v21 = vmul.f32 0.0078125, %v1388_v28  ;;  %v3896_v28 = vld [vmem:[#allocation14_spill] sm:$0xff] }
 0x53f   : > { %v1400_v2 = vsub.f32 %v1383_v20, %v1396_v21  ;;  %v1479_v21 = vsub.s32 %v3350_v62, %v3896_v28  ;;  %v1505_v62 = vstv %s1504_s16 }
 0x540   : > { %v1390_v59 = vpop.xlane.xlu0 %1389 }
 0x541   : > { %v1397_v49 = vmul.f32 0.0078125, %v1390_v59  ;;  %v1404_v48 = vmul.f32 %v1400_v2, %v1400_v2 }
 0x543   : > { %v1401_v56 = vsub.f32 %v1384_v13, %v1397_v49  ;;  %1408 = vadd.xlane.f32.xlu1 %v1404_v48 }
 0x545   : > { %v1405_v14 = vmul.f32 %v1401_v56, %v1401_v56 }
 0x547   : > { %1410 = vadd.xlane.f32.xlu0 %v1405_v14 }
 0x57c   : > { %v1392_v10 = vpop.xlane.xlu1 %1391 }
 0x57d   : > { %v1398_v25 = vmul.f32 0.0078125, %v1392_v10 }
 0x57f   : > { %v3762_v23 = vsub.f32 %v1385_v32, %v1398_v25 }
 0x580   : > { %v1394_v33 = vpop.xlane.xlu0 %1393 }
 0x581   : > { %v1399_v18 = vmul.f32 0.0078125, %v1394_v33  ;;  %v1406_v36 = vmul.f32 %v3762_v23, %v3762_v23 }
 0x583   : > { %v3766_v22 = vsub.f32 %v1386_v51, %v1399_v18  ;;  %1412 = vadd.xlane.f32.xlu1 %v1406_v36 }
 0x585   : > { %v1407_v26 = vmul.f32 %v3766_v22, %v3766_v22 }
 0x587   : > { %1414 = vadd.xlane.f32.xlu0 %v1407_v26 }
 0x5d0   : > { %v1409_v31 = vpop.xlane.xlu1 %1408 }
 0x5d1   : > { %v1416_v35 = vmul.f32 0.007874016, %v1409_v31 }
 0x5d3   : > { %2653 = vrsqrt.f32 %v1416_v35  ;;  %vm1422_vm13 = vcmp.eq.f32.partialorder %v1416_v35, inf  ;;  %v1425_v58 = vand.u32 2147483648, %v1416_v35  ;;  %vm1424_vm14 = vcmp.eq.f32.partialorder %v1416_v35, 0.0 }
 0x5d4   : > { %v1411_v40 = vpop.xlane.xlu0 %1410 }
 0x5d5   : > { %v1417_v43 = vmul.f32 0.007874016, %v1411_v40 }
 0x5d7   : > { %2655 = vrsqrt.f32 %v1417_v43  ;;  %vm1429_vm15 = vcmp.eq.f32.partialorder %v1417_v43, inf  ;;  %v1432_v38 = vand.u32 2147483648, %v1417_v43  ;;  %vm1431_vm0 = vcmp.eq.f32.partialorder %v1417_v43, 0.0 }
 0x5dd   : > { %v2654_v52 = vpop.eup %2653 }
 0x5de   : > { %v1421_v55 = vmul.f32 %v2654_v52, %v1416_v35 }
 0x5e0   : > { %v1423_v4 = vsel %vm1422_vm13, %v1416_v35, %v1421_v55 }
 0x5e1   : > { %v2656_v7 = vpop.eup %2655  ;;  %v1426_v12 = vsel %vm1424_vm14, %v1425_v58, %v1423_v4 }
 0x5e2   : > { %v1428_v16 = vmul.f32 %v2656_v7, %v1417_v43  ;;  %v1448_v17 = vadd.f32 1e-06, %v1426_v12 }
 0x5e4   : > { %2657 = vrcp.f32 %v1448_v17  ;;  %v1430_v5 = vsel %vm1429_vm15, %v1417_v43, %v1428_v16 }
 0x5e5   : > { %v1433_v3 = vsel %vm1431_vm0, %v1432_v38, %v1430_v5 }
 0x5e6   : > { %v1449_v19 = vadd.f32 1e-06, %v1433_v3 }
 0x5e8   : > { %2659 = vrcp.f32 %v1449_v19 }
 0x5ee   : > { %v2658_v63 = vpop.eup %2657 }
 0x5ef   : > { %v1453_v47 = vmul.f32 %v2658_v63, %v1400_v2 }
 0x5f1   : > { %v1461_v0 = vmul.f32 %v1460_v37, %v1453_v47 }
 0x5f2   : > { %v2660_v24 = vpop.eup %2659 }
 0x5f3   : > { %1465 = vadd.xlane.f32.xlu1 %v1461_v0  ;;  %v1455_v6 = vmul.f32 %v2660_v24, %v1401_v56 }
 0x5f5   : > { %v1462_v34 = vmul.f32 %v1460_v37, %v1455_v6 }
 0x5f7   : > { %1467 = vadd.xlane.f32.xlu0 %v1462_v34 }
 0x610   : > { %v1413_v30 = vpop.xlane.xlu1 %1412 }
 0x611   : > { %v1418_v9 = vmul.f32 0.007874016, %v1413_v30 }
 0x613   : > { %2661 = vrsqrt.f32 %v1418_v9  ;;  %vm1436_vm1 = vcmp.eq.f32.partialorder %v1418_v9, inf  ;;  %v1439_v1 = vand.u32 2147483648, %v1418_v9  ;;  %vm1438_vm2 = vcmp.eq.f32.partialorder %v1418_v9, 0.0 }
 0x614   : > { %v1415_v44 = vpop.xlane.xlu0 %1414 }
 0x615   : > { %v1419_v42 = vmul.f32 0.007874016, %v1415_v44 }
 0x617   : > { %2663 = vrsqrt.f32 %v1419_v42  ;;  %vm1443_vm3 = vcmp.eq.f32.partialorder %v1419_v42, inf  ;;  %v1446_v41 = vand.u32 2147483648, %v1419_v42  ;;  %vm1445_vm4 = vcmp.eq.f32.partialorder %v1419_v42, 0.0 }
 0x61d   : > { %v2662_v45 = vpop.eup %2661 }
 0x61e   : > { %v1435_v15 = vmul.f32 %v2662_v45, %v1418_v9 }
 0x620   : > { %v1437_v61 = vsel %vm1436_vm1, %v1418_v9, %v1435_v15 }
 0x621   : > { %v2664_v57 = vpop.eup %2663  ;;  %v1440_v29 = vsel %vm1438_vm2, %v1439_v1, %v1437_v61 }
 0x622   : > { %v1442_v11 = vmul.f32 %v2664_v57, %v1419_v42  ;;  %v1450_v8 = vadd.f32 1e-06, %v1440_v29 }
 0x624   : > { %2665 = vrcp.f32 %v1450_v8  ;;  %v1444_v20 = vsel %vm1443_vm3, %v1419_v42, %v1442_v11 }
 0x625   : > { %v1447_v50 = vsel %vm1445_vm4, %v1446_v41, %v1444_v20 }
 0x626   : > { %v1451_v27 = vadd.f32 1e-06, %v1447_v50 }
 0x628   : > { %2667 = vrcp.f32 %v1451_v27 }
 0x62e   : > { %v2666_v13 = vpop.eup %2665 }
 0x62f   : > { %v1457_v60 = vmul.f32 %v2666_v13, %v3762_v23 }
 0x631   : > { %v1463_v39 = vmul.f32 %v1460_v37, %v1457_v60 }
 0x632   : > { %v2668_v32 = vpop.eup %2667 }
 0x633   : > { %1469 = vadd.xlane.f32.xlu1 %v1463_v39  ;;  %v1459_v46 = vmul.f32 %v2668_v32, %v3766_v22 }
 0x635   : > { %v1464_v53 = vmul.f32 %v1460_v37, %v1459_v46 }
 0x637   : > { %1471 = vadd.xlane.f32.xlu0 %v1464_v53 }
 0x680   : > { %v1466_v51 = vpop.xlane.xlu1 %1465 }
 0x681   : > { %v1480_v48 = vrot.slane %v1466_v51, %v1479_v21 }
 0x684   : > { %v1468_v54 = vpop.xlane.xlu0 %1467 }
 0x685   : > { %v1484_v59 = vrot.slane %v1468_v54, %v1479_v21 }
 0x687   : > { %v1494_v14 = vsel %vm1493_vm5, %v1484_v59, %v1480_v48 }
 0x6c0   : > { %v1470_v2 = vpop.xlane.xlu1 %1469 }
 0x6c1   : > { %v1488_v49 = vrot.slane %v1470_v2, %v1479_v21 }
 0x6c3   : > { %v1496_v25 = vsel %vm1495_vm6, %v1488_v49, %v1494_v14 }
 0x6c4   : > { %v1472_v56 = vpop.xlane.xlu0 %1471 }
 0x6c5   : > { %v1492_v10 = vrot.slane %v1472_v56, %v1479_v21 }
 0x6c7   : > { %v1498_v23 = vsel %vm1497_vm7, %v1492_v10, %v1496_v25 }
 0x6c8   : > { %v1501_v33 = vsel %vm1500_vm8, %v1498_v23, 0.0 }
 0x6c9   : > { %1502 = vadd.xlane.f32.xlu1 %v1501_v33 }
 0x756   : > { %v1503_v18 = vpop.xlane.xlu1 %1502 }
 0x757   : > { %v1506_v36 = vadd.f32 %v1505_v62, %v1503_v18 }
 0x759   : > { %v1511_v22 = vrot.slane %v1506_v36, %v1479_v21 }
 0x75b   : > { %1514 = vst.msk [vmem:[%s294_s8] sm:$0x1] %vm1513_vm9, %v1511_v22 }
 0x75c   : > { %2770 = shalt.err (!%p2767_p6)
}
 0x75d   : > { %s2771_s30 = scalar_lea.hbm %s3782_s10, 16  ;;  %s2775_s11 = scalar_lea.hbm %s3831_s5, 32 }
 0x75e   : > { %p2772_p8 = scmp.ne.s32.totalorder %s3782_s10, %s2771_s30  ;;  %p2776_p4 = scmp.lt.u32.totalorder %s3782_s10, %s3831_s5 }
 0x75f   : > { %p2777_p11 = scmp.lt.u32.totalorder %s2775_s11, %s2771_s30  ;;  %p2779_p3 = scmp.lt.u32.totalorder %s2771_s30, %s3782_s10 }
 0x760   : > { %p2773_p10 = pnand %p2772_p8, %p2970_p12 }
 0x761   : > { %p2778_p13 = por %p2777_p11, %p2776_p4 }
 0x762   : > { %p2774_p0 = pneg %p2773_p10 }
 0x763   : > { %p2780_p7 = por %p2779_p3, %p2778_p13 }
 0x765   : > { %p2781_p9 = pnand %p2780_p7, %p2774_p0 }
 0x767   : > { %2784 = shalt.err (!%p2781_p9)
}
 0x768   : > { %2577 = dma.vmem_to_hbm [thread:$0]  (%p2970_p12), %s3784_s24, 16, %s3782_s10, %s1516_s12  }
 0x769 PF: > { %s1540_s16 = sand.u32 1, %s2819_s20   ;;  %p3897_p1 = scmp.ne.s32.totalorder %s3860_s26, 0 }
 0x76a   : > { %p3898_p5 = scmp.ge.s32.totalorder %s2831_s23, 2  ;;  %s1541_s19 = scalar_lea.sflag [#allocation5], %s1540_s16 }
 0x76c   : > { %p2591_p2 = pnand %p3898_p5, %p3897_p1 }
 0x76e   : > { %2814 = dma.done.wait (!%p2591_p2), %s1541_s19, 16  }
 0x76f   : > { %2816 = vsyncadd (!%p2591_p2), %s1541_s19, 4294967280  ;;  %p22_p6 = scmp.ge.s32.totalorder %s2932_s6, 4   ;;  %s3899_s20 = smov %s2823_s21 }
 0x770   : > { %s3900_s21 = smov %s2827_s22  ;;  %s3901_s22 = smov %s2966_s28 }
 0x771   : > { %s3902_s23 = smov %s2932_s6  ;;  %24 = sbr.rel (!%p22_p6) target bundleno = 9 (0x9), region = 102 }
 0x778   :  { %1545 = vsyncpa [#allocation4], 1 }
 0x779   :  { %1547 = vsyncpa [#allocation4 + $0x1], 1 }
 0x77a   :  { %1548 = vsyncpa [#allocation7], 1 }
 0x77b   :  { %1550 = vsyncpa [#allocation7 + $0x1], 1 }
 0x77c   :  { %1551 = vsyncpa [#allocation5], 1 }
 0x77d   :  { %1553 = vsyncpa [#allocation5 + $0x1], 1 }

</bundles_post_ra>
